<compile_context>
chip_gen: v7x
topology: tpu7x:2x2x1
jax: 0.10.0
libtpu: 0.0.40
codegen_flags: <defaults>
</compile_context>

<pallas_src>
import functools
import math

import jax
import jax.numpy as jnp
from jax.experimental import pallas as pl
from jax.experimental.pallas import tpu as pltpu

VMEM = pl.BlockSpec(memory_space=pltpu.MemorySpace.VMEM)

CFG = dict(hidden=32, n_heads=4, head_dim=8, intermediate=64, n_layers=2,
           vocab=64, max_pos=64, pad_idx=1, num_class=3, eps=1e-5)

ROW_W = 128          # lane width of the f32 row-param slab and the output slab
BIG_NEG = -1e9       # cross-batch mask value (exp underflows to exactly 0 in f32)


# ---------------------------------------------------------------- fused Pallas kernel

def _fused_forward_kernel(
    emb_ref, bias_ref, w32_ref, w64_ref, pcol_ref, prow_ref, out_ref,
    *, B, S, H, nH, Dh, I, L, eps):
  """Whole RoBERTa-style encoder (L layers) + classifier heads in one invocation.

  emb_ref : (B*S, H)    f32   embeddings (word+pos+type), pre-LayerNorm
  bias_ref: (B*S, B*S)  f32   additive attention bias (padding + cross-batch mask)
  w32_ref : (448, 32)   bf16  packed weights: wqkv^T | wo | wo2 | dense | cls(pad)
  w64_ref : (64, 64)    bf16  packed wi (both layers)
  pcol_ref: (L*3H, 1)   f32   qkv bias columns
  prow_ref: (20, 128)   f32   row params: LN gammas/betas, bo, bi, bo2, dense_b, cls_b
  out_ref : (8, 128)    f32   lane-dense output slab: seq in lanes [0,H), pre in [H,2H)
  """
  f32, bf16 = jnp.float32, jnp.bfloat16
  N = B * S
  scale = 1.0 / math.sqrt(Dh)
  inv_sqrt2 = 1.0 / math.sqrt(2.0)

  # Static row offsets into the packed bf16 width-32 weight slab (all multiples of 16).
  OFF_WQKV = 0
  OFF_WO = OFF_WQKV + L * 3 * H
  OFF_WO2 = OFF_WO + L * H
  OFF_DENSE = OFF_WO2 + L * I
  OFF_CLS = OFF_DENSE + H

  def prow(r, width):                      # (1, width) f32 row parameter
    return prow_ref[r:r + 1, 0:width]

  def layer_norm(x, g, b):
    mean = jnp.mean(x, axis=-1, keepdims=True)
    var = jnp.mean((x - mean) ** 2, axis=-1, keepdims=True)
    return (x - mean) * jax.lax.rsqrt(var + eps) * g + b

  def mm(x_f32, w_bf16):                   # MXU: bf16 inputs, f32 accumulation
    return jnp.dot(x_f32.astype(bf16), w_bf16, preferred_element_type=f32)

  # Embedding LayerNorm (no residual input).
  h = layer_norm(emb_ref[...], prow(0, H), prow(1, H))                    # (N, H) f32

  bias_full = bias_ref[...]                                               # (N, N) f32

  for l in range(L):                       # static unroll (L = 2)
    wqkvT = w32_ref[OFF_WQKV + l * 3 * H: OFF_WQKV + (l + 1) * 3 * H, :]  # (3H, H)
    wo = w32_ref[OFF_WO + l * H: OFF_WO + (l + 1) * H, :]                 # (H, H)
    wo2 = w32_ref[OFF_WO2 + l * I: OFF_WO2 + (l + 1) * I, :]              # (I, H)
    wi = w64_ref[l * H:(l + 1) * H, :]                                    # (H, I)
    bqkvT = pcol_ref[l * 3 * H:(l + 1) * 3 * H, :]                        # (3H, 1)
    base = 2 + 8 * l
    bo, ln1g, ln1b = prow(base, H), prow(base + 1, H), prow(base + 2, H)
    bi = prow(base + 3, I)
    bo2, ln2g, ln2b = prow(base + 4, H), prow(base + 5, H), prow(base + 6, H)

    # Fused QKV projection, transposed orientation (heads land on the sublane axis).
    qkvT = jax.lax.dot_general(
        wqkvT, h.astype(bf16),
        dimension_numbers=(((1,), (1,)), ((), ())),
        preferred_element_type=f32) + bqkvT                               # (3H, N)

    ctx_heads = []
    for hd in range(nH):                   # per-head slices are clean sublane slices
      qT = qkvT[hd * Dh:(hd + 1) * Dh, :]                                 # (Dh, N)
      kT = qkvT[H + hd * Dh: H + (hd + 1) * Dh, :]                        # (Dh, N)
      vT = qkvT[2 * H + hd * Dh: 2 * H + (hd + 1) * Dh, :]                # (Dh, N)
      # scores = q @ k^T == qT^T-contraction (LHS-transposed dot_general).
      s = jax.lax.dot_general(
          qT.astype(bf16), kT.astype(bf16),
          dimension_numbers=(((0,), (0,)), ((), ())),
          preferred_element_type=f32) * scale + bias_full                 # (N, N)
      s = s - jnp.max(s, axis=-1, keepdims=True)
      p = jnp.exp(s)
      p = p * pl.reciprocal(jnp.sum(p, axis=-1, keepdims=True), approx=True)
      # ctx = p @ v (RHS-transposed dot_general against vT).
      ctx = jax.lax.dot_general(
          p.astype(bf16), vT.astype(bf16),
          dimension_numbers=(((1,), (1,)), ((), ())),
          preferred_element_type=f32)                                     # (N, Dh)
      ctx_heads.append(ctx)
    ctx_cat = jnp.concatenate(ctx_heads, axis=-1)                         # (N, H)
    attn = mm(ctx_cat, wo) + bo                     # single K=H output projection
    h = layer_norm(attn + h, ln1g, ln1b)

    # Feed-forward (exact-erf GELU, f32 math), fused with residual LN.
    inter = mm(h, wi) + bi                                                # (N, I)
    inter = 0.5 * inter * (1.0 + jax.lax.erf(inter * inv_sqrt2))
    ffn = mm(inter, wo2) + bo2                                            # (N, H)
    h = layer_norm(ffn + h, ln2g, ln2b)

  # Heads: CLS rows via static sublane slices (rows b*S), dense + classifier.
  cls = jnp.concatenate([h[b * S:b * S + 1, :] for b in range(B)], axis=0)  # (B, H)
  x_seq = mm(cls, w32_ref[OFF_DENSE:OFF_DENSE + H, :]) + prow(2 + 8 * L, H)  # (B, H)
  x_pre = mm(x_seq, w32_ref[OFF_CLS:OFF_CLS + H, :]) + prow(3 + 8 * L, H)    # (B, H); cols >= C are 0

  # Single lane-dense output slab: one unmasked full store, one output DMA.
  out_rows, out_lanes = out_ref.shape
  pieces = [x_seq, x_pre]
  if out_lanes > 2 * H:
    pieces.append(jnp.zeros((B, out_lanes - 2 * H), f32))
  row_blk = jnp.concatenate(pieces, axis=-1)                              # (B, 128)
  if out_rows > B:
    row_blk = jnp.concatenate(
        [row_blk, jnp.zeros((out_rows - B, out_lanes), f32)], axis=0)
  out_ref[...] = row_blk


# ---------------------------------------------------------------- params / packing

def init_params(key, cfg):
  H, I_, V = cfg["hidden"], cfg["intermediate"], cfg["vocab"]
  L, C, P = cfg["n_layers"], cfg["num_class"], cfg["max_pos"]
  keys = iter(jax.random.split(key, 32))
  n = lambda shape, std=0.02: std * jax.random.normal(next(keys), shape, jnp.float32)

  # logical parameters (torch Linear weights stored transposed: (in, out))
  wqkv = n((L, H, 3 * H)); bqkv = jnp.zeros((L, 3 * H), jnp.float32)
  wo = n((L, H, H));       bo = jnp.zeros((L, H), jnp.float32)
  ln1_g = jnp.ones((L, H), jnp.float32); ln1_b = jnp.zeros((L, H), jnp.float32)
  wi = n((L, H, I_));      bi = jnp.zeros((L, I_), jnp.float32)
  wo2 = n((L, I_, H));     bo2 = jnp.zeros((L, H), jnp.float32)
  ln2_g = jnp.ones((L, H), jnp.float32); ln2_b = jnp.zeros((L, H), jnp.float32)
  emb_ln_g = jnp.ones((H,), jnp.float32); emb_ln_b = jnp.zeros((H,), jnp.float32)
  dense_w = n((H, H));     dense_b = jnp.zeros((H,), jnp.float32)
  cls_w = n((H, C), std=0.001)           # weights_init_classifier: normal std=0.001
  cls_b = jnp.zeros((C,), jnp.float32)   # bias = 0

  # ---- pack once at init: bf16 weight slabs + f32 param slabs (no per-forward casts)
  w32 = jnp.concatenate([
      jnp.transpose(wqkv, (0, 2, 1)).reshape(L * 3 * H, H),   # W^T rows, head-major
      wo.reshape(L * H, H),
      wo2.reshape(L * I_, H),
      dense_w,
      jnp.pad(cls_w, ((0, 0), (0, H - C))),                   # zero-pad classes to H
  ], axis=0).astype(jnp.bfloat16)                              # (448, 32)
  w64 = wi.reshape(L * H, I_).astype(jnp.bfloat16)             # (64, 64)
  pcol = bqkv.reshape(L * 3 * H, 1)                            # (192, 1) f32

  def rowpad(v):
    return jnp.pad(v, (0, ROW_W - v.shape[0])).reshape(1, ROW_W)

  rows = [rowpad(emb_ln_g), rowpad(emb_ln_b)]
  for l in range(L):
    rows += [rowpad(bo[l]), rowpad(ln1_g[l]), rowpad(ln1_b[l]), rowpad(bi[l]),
             rowpad(bo2[l]), rowpad(ln2_g[l]), rowpad(ln2_b[l]),
             rowpad(jnp.zeros((H,), jnp.float32))]              # alignment padding row
  rows += [rowpad(dense_b), rowpad(cls_b)]
  prow = jnp.concatenate(rows, axis=0)                          # (20, 128) f32

  return {
      "word_emb": n((V, H)),
      "pos_emb": n((P, H)),
      "type_emb": n((1, H)),
      "w32": w32, "w64": w64, "pcol": pcol, "prow": prow,
  }


# ---------------------------------------------------------------- forward wrapper

def transformer_final_forward(params, input_ids, attention_mask, mlm_labels, cfg=CFG):
  bool_mlm_labels = mlm_labels > 0   # computed as in the reference forward (unused)
  del bool_mlm_labels

  B, S = input_ids.shape
  H, nH, Dh = cfg["hidden"], cfg["n_heads"], cfg["head_dim"]
  I_, L, C = cfg["intermediate"], cfg["n_layers"], cfg["num_class"]
  N = B * S

  # --- Roberta embeddings (gathers stay in JAX; everything else fused) ---
  keep = (input_ids != cfg["pad_idx"]).astype(jnp.int32)
  position_ids = jnp.cumsum(keep, axis=1) * keep + cfg["pad_idx"]
  token_type_ids = jnp.zeros_like(input_ids)
  emb = (jnp.take(params["word_emb"], input_ids, axis=0)
         + jnp.take(params["pos_emb"], position_ids, axis=0)
         + jnp.take(params["type_emb"], token_type_ids, axis=0))
  emb_flat = emb.reshape(N, H).astype(jnp.float32)

  # (N, N) additive attention bias: HF padding bias (-10000*(1-mask)) per key token,
  # BIG_NEG for cross-batch pairs. The kernel softmaxes over all B*S keys at once;
  # cross-batch logits underflow to exactly 0, so this equals per-batch attention.
  tok = jnp.arange(N)
  same_batch = (tok[:, None] // S) == (tok[None, :] // S)
  pad_bias = ((1.0 - attention_mask.astype(jnp.float32)) * (-10000.0)).reshape(1, N)
  bias_full = jnp.where(same_batch, pad_bias, jnp.float32(BIG_NEG))

  out_rows = ((max(B, 1) + 7) // 8) * 8
  kernel = functools.partial(_fused_forward_kernel,
                             B=B, S=S, H=H, nH=nH, Dh=Dh, I=I_, L=L, eps=cfg["eps"])
  out_slab = pl.pallas_call(
      kernel,
      out_shape=jax.ShapeDtypeStruct((out_rows, ROW_W), jnp.float32),
      in_specs=[VMEM] * 6,
      out_specs=VMEM,
  )(emb_flat, bias_full, params["w32"], params["w64"], params["pcol"], params["prow"])

  x_seq = out_slab[:B, :H]
  x_pre = out_slab[:B, H:H + C]
  return x_seq, x_seq, x_pre


# ---------------------------------------------------------------- main

if __name__ == "__main__":
  key = jax.random.PRNGKey(0)
  k_par, k_ids, k_lab = jax.random.split(key, 3)

  B, S = 2, 8
  params = init_params(k_par, CFG)
  input_ids = jax.random.randint(k_ids, (B, S), 2, CFG["vocab"], dtype=jnp.int32)
  attention_mask = jnp.ones((B, S), jnp.int32)
  mlm_labels = jax.random.randint(k_lab, (B, S), -1, CFG["vocab"], dtype=jnp.int32)

  fwd = jax.jit(functools.partial(transformer_final_forward, cfg=CFG))
  x_seq, x_seq2, x_pre = fwd(params, input_ids, attention_mask, mlm_labels)
  jax.block_until_ready((x_seq, x_seq2, x_pre))

  assert x_seq.shape == (B, CFG["hidden"])
  assert x_seq2.shape == (B, CFG["hidden"])
  assert x_pre.shape == (B, CFG["num_class"])
  assert bool(jnp.all(jnp.isfinite(x_seq))) and bool(jnp.all(jnp.isfinite(x_pre)))
  print("KERNEL_OK")
</pallas_src>

<mosaic_0001>
module attributes {stable_mosaic.version = 11 : i64} {
  func.func @_fused_forward_kernel(%arg0: memref<16x32xf32, #tpu.memory_space<vmem>>, %arg1: memref<16x16xf32, #tpu.memory_space<vmem>>, %arg2: memref<448x32xbf16, #tpu.memory_space<vmem>>, %arg3: memref<64x64xbf16, #tpu.memory_space<vmem>>, %arg4: memref<192x1xf32, #tpu.memory_space<vmem>>, %arg5: memref<20x128xf32, #tpu.memory_space<vmem>>, %arg6: memref<8x128xf32, #tpu.memory_space<vmem>>) attributes {dimension_semantics = [], scalar_prefetch = 0 : i64, scratch_operands = 0 : i64, tpu.core_type = #tpu.core_type<tc>} {
    %c0 = arith.constant 0 : index
    %c0_0 = arith.constant 0 : index
    %0 = vector.load %arg0[%c0, %c0_0] : memref<16x32xf32, #tpu.memory_space<vmem>>, vector<16x32xf32>
    %c0_1 = arith.constant 0 : index
    %c0_2 = arith.constant 0 : index
    %1 = vector.load %arg5[%c0_1, %c0_2] : memref<20x128xf32, #tpu.memory_space<vmem>>, vector<1x32xf32>
    %c1 = arith.constant 1 : index
    %c0_3 = arith.constant 0 : index
    %2 = vector.load %arg5[%c1, %c0_3] : memref<20x128xf32, #tpu.memory_space<vmem>>, vector<1x32xf32>
    %cst = arith.constant dense<0.000000e+00> : vector<16xf32>
    %3 = vector.multi_reduction <add>, %0, %cst [1] : vector<16x32xf32> to vector<16xf32>
    %4 = vector.shape_cast %3 : vector<16xf32> to vector<16x1xf32>
    %cst_4 = arith.constant 3.200000e+01 : f32
    %5 = vector.broadcast %cst_4 : f32 to vector<16x1xf32>
    %6 = arith.divf %4, %5 : vector<16x1xf32>
    %7 = vector.broadcast %6 : vector<16x1xf32> to vector<16x32xf32>
    %8 = arith.subf %0, %7 : vector<16x32xf32>
    %9 = arith.mulf %8, %8 : vector<16x32xf32>
    %cst_5 = arith.constant dense<0.000000e+00> : vector<16xf32>
    %10 = vector.multi_reduction <add>, %9, %cst_5 [1] : vector<16x32xf32> to vector<16xf32>
    %11 = vector.shape_cast %10 : vector<16xf32> to vector<16x1xf32>
    %cst_6 = arith.constant 3.200000e+01 : f32
    %12 = vector.broadcast %cst_6 : f32 to vector<16x1xf32>
    %13 = arith.divf %11, %12 : vector<16x1xf32>
    %14 = vector.broadcast %6 : vector<16x1xf32> to vector<16x32xf32>
    %15 = arith.subf %0, %14 : vector<16x32xf32>
    %cst_7 = arith.constant 9.99999974E-6 : f32
    %16 = vector.broadcast %cst_7 : f32 to vector<16x1xf32>
    %17 = arith.addf %13, %16 : vector<16x1xf32>
    %18 = math.rsqrt %17 : vector<16x1xf32>
    %19 = vector.broadcast %18 : vector<16x1xf32> to vector<16x32xf32>
    %20 = arith.mulf %15, %19 : vector<16x32xf32>
    %21 = vector.broadcast %1 : vector<1x32xf32> to vector<16x32xf32>
    %22 = arith.mulf %20, %21 : vector<16x32xf32>
    %23 = vector.broadcast %2 : vector<1x32xf32> to vector<16x32xf32>
    %24 = arith.addf %22, %23 : vector<16x32xf32>
    %c0_8 = arith.constant 0 : index
    %c0_9 = arith.constant 0 : index
    %25 = vector.load %arg1[%c0_8, %c0_9] : memref<16x16xf32, #tpu.memory_space<vmem>>, vector<16x16xf32>
    %c0_10 = arith.constant 0 : index
    %c0_11 = arith.constant 0 : index
    %26 = vector.load %arg2[%c0_10, %c0_11] : memref<448x32xbf16, #tpu.memory_space<vmem>>, vector<96x32xbf16>
    %c192 = arith.constant 192 : index
    %c0_12 = arith.constant 0 : index
    %27 = vector.load %arg2[%c192, %c0_12] : memref<448x32xbf16, #tpu.memory_space<vmem>>, vector<32x32xbf16>
    %c256 = arith.constant 256 : index
    %c0_13 = arith.constant 0 : index
    %28 = vector.load %arg2[%c256, %c0_13] : memref<448x32xbf16, #tpu.memory_space<vmem>>, vector<64x32xbf16>
    %c0_14 = arith.constant 0 : index
    %c0_15 = arith.constant 0 : index
    %29 = vector.load %arg3[%c0_14, %c0_15] : memref<64x64xbf16, #tpu.memory_space<vmem>>, vector<32x64xbf16>
    %c0_16 = arith.constant 0 : index
    %c0_17 = arith.constant 0 : index
    %30 = vector.load %arg4[%c0_16, %c0_17] : memref<192x1xf32, #tpu.memory_space<vmem>>, vector<96x1xf32>
    %c2 = arith.constant 2 : index
    %c0_18 = arith.constant 0 : index
    %31 = vector.load %arg5[%c2, %c0_18] : memref<20x128xf32, #tpu.memory_space<vmem>>, vector<1x32xf32>
    %c3 = arith.constant 3 : index
    %c0_19 = arith.constant 0 : index
    %32 = vector.load %arg5[%c3, %c0_19] : memref<20x128xf32, #tpu.memory_space<vmem>>, vector<1x32xf32>
    %c4 = arith.constant 4 : index
    %c0_20 = arith.constant 0 : index
    %33 = vector.load %arg5[%c4, %c0_20] : memref<20x128xf32, #tpu.memory_space<vmem>>, vector<1x32xf32>
    %c5 = arith.constant 5 : index
    %c0_21 = arith.constant 0 : index
    %34 = vector.load %arg5[%c5, %c0_21] : memref<20x128xf32, #tpu.memory_space<vmem>>, vector<1x64xf32>
    %c6 = arith.constant 6 : index
    %c0_22 = arith.constant 0 : index
    %35 = vector.load %arg5[%c6, %c0_22] : memref<20x128xf32, #tpu.memory_space<vmem>>, vector<1x32xf32>
    %c7 = arith.constant 7 : index
    %c0_23 = arith.constant 0 : index
    %36 = vector.load %arg5[%c7, %c0_23] : memref<20x128xf32, #tpu.memory_space<vmem>>, vector<1x32xf32>
    %c8 = arith.constant 8 : index
    %c0_24 = arith.constant 0 : index
    %37 = vector.load %arg5[%c8, %c0_24] : memref<20x128xf32, #tpu.memory_space<vmem>>, vector<1x32xf32>
    %38 = arith.truncf %24 : vector<16x32xf32> to vector<16x32xbf16>
    %cst_25 = arith.constant dense<0.000000e+00> : vector<96x16xf32>
    %39 = tpu.matmul %26, %38, %cst_25 {dimension_numbers = #tpu.dot_dimension_numbers<[1], [1], [0], [0], [0, 0, 1, 0], [], []>} : vector<96x32xbf16>, vector<16x32xbf16>, vector<96x16xf32> -> vector<96x16xf32>
    %40 = vector.broadcast %30 : vector<96x1xf32> to vector<96x16xf32>
    %41 = arith.addf %39, %40 : vector<96x16xf32>
    %42 = vector.extract_strided_slice %41 {offsets = [0, 0], sizes = [8, 16], strides = [1, 1]} : vector<96x16xf32> to vector<8x16xf32>
    %43 = vector.extract_strided_slice %41 {offsets = [32, 0], sizes = [8, 16], strides = [1, 1]} : vector<96x16xf32> to vector<8x16xf32>
    %44 = vector.extract_strided_slice %41 {offsets = [64, 0], sizes = [8, 16], strides = [1, 1]} : vector<96x16xf32> to vector<8x16xf32>
    %45 = arith.truncf %42 : vector<8x16xf32> to vector<8x16xbf16>
    %46 = arith.truncf %43 : vector<8x16xf32> to vector<8x16xbf16>
    %cst_26 = arith.constant dense<0.000000e+00> : vector<16x16xf32>
    %47 = tpu.matmul %45, %46, %cst_26 {dimension_numbers = #tpu.dot_dimension_numbers<[0], [0], [1], [1], [0, 1, 1, 1], [], []>} : vector<8x16xbf16>, vector<8x16xbf16>, vector<16x16xf32> -> vector<16x16xf32>
    %cst_27 = arith.constant 0.353553385 : f32
    %48 = vector.broadcast %cst_27 : f32 to vector<16x16xf32>
    %49 = arith.mulf %47, %48 : vector<16x16xf32>
    %50 = arith.addf %49, %25 : vector<16x16xf32>
    %cst_28 = arith.constant dense<0xFF800000> : vector<16xf32>
    %51 = vector.multi_reduction <maximumf>, %50, %cst_28 [1] : vector<16x16xf32> to vector<16xf32>
    %52 = vector.shape_cast %51 : vector<16xf32> to vector<16x1xf32>
    %53 = vector.broadcast %52 : vector<16x1xf32> to vector<16x16xf32>
    %54 = arith.subf %50, %53 : vector<16x16xf32>
    %55 = math.exp %54 : vector<16x16xf32>
    %cst_29 = arith.constant dense<0.000000e+00> : vector<16xf32>
    %56 = vector.multi_reduction <add>, %55, %cst_29 [1] : vector<16x16xf32> to vector<16xf32>
    %57 = vector.shape_cast %56 : vector<16xf32> to vector<16x1xf32>
    %58 = tpu.reciprocal %57 {approx = true} : vector<16x1xf32> -> vector<16x1xf32>
    %59 = vector.broadcast %58 : vector<16x1xf32> to vector<16x16xf32>
    %60 = arith.mulf %55, %59 : vector<16x16xf32>
    %61 = arith.truncf %60 : vector<16x16xf32> to vector<16x16xbf16>
    %62 = arith.truncf %44 : vector<8x16xf32> to vector<8x16xbf16>
    %cst_30 = arith.constant dense<0.000000e+00> : vector<16x8xf32>
    %63 = tpu.matmul %61, %62, %cst_30 {dimension_numbers = #tpu.dot_dimension_numbers<[1], [1], [0], [0], [0, 0, 1, 0], [], []>} : vector<16x16xbf16>, vector<8x16xbf16>, vector<16x8xf32> -> vector<16x8xf32>
    %64 = vector.extract_strided_slice %41 {offsets = [8, 0], sizes = [8, 16], strides = [1, 1]} : vector<96x16xf32> to vector<8x16xf32>
    %65 = vector.extract_strided_slice %41 {offsets = [40, 0], sizes = [8, 16], strides = [1, 1]} : vector<96x16xf32> to vector<8x16xf32>
    %66 = vector.extract_strided_slice %41 {offsets = [72, 0], sizes = [8, 16], strides = [1, 1]} : vector<96x16xf32> to vector<8x16xf32>
    %67 = arith.truncf %64 : vector<8x16xf32> to vector<8x16xbf16>
    %68 = arith.truncf %65 : vector<8x16xf32> to vector<8x16xbf16>
    %cst_31 = arith.constant dense<0.000000e+00> : vector<16x16xf32>
    %69 = tpu.matmul %67, %68, %cst_31 {dimension_numbers = #tpu.dot_dimension_numbers<[0], [0], [1], [1], [0, 1, 1, 1], [], []>} : vector<8x16xbf16>, vector<8x16xbf16>, vector<16x16xf32> -> vector<16x16xf32>
    %cst_32 = arith.constant 0.353553385 : f32
    %70 = vector.broadcast %cst_32 : f32 to vector<16x16xf32>
    %71 = arith.mulf %69, %70 : vector<16x16xf32>
    %72 = arith.addf %71, %25 : vector<16x16xf32>
    %cst_33 = arith.constant dense<0xFF800000> : vector<16xf32>
    %73 = vector.multi_reduction <maximumf>, %72, %cst_33 [1] : vector<16x16xf32> to vector<16xf32>
    %74 = vector.shape_cast %73 : vector<16xf32> to vector<16x1xf32>
    %75 = vector.broadcast %74 : vector<16x1xf32> to vector<16x16xf32>
    %76 = arith.subf %72, %75 : vector<16x16xf32>
    %77 = math.exp %76 : vector<16x16xf32>
    %cst_34 = arith.constant dense<0.000000e+00> : vector<16xf32>
    %78 = vector.multi_reduction <add>, %77, %cst_34 [1] : vector<16x16xf32> to vector<16xf32>
    %79 = vector.shape_cast %78 : vector<16xf32> to vector<16x1xf32>
    %80 = tpu.reciprocal %79 {approx = true} : vector<16x1xf32> -> vector<16x1xf32>
    %81 = vector.broadcast %80 : vector<16x1xf32> to vector<16x16xf32>
    %82 = arith.mulf %77, %81 : vector<16x16xf32>
    %83 = arith.truncf %82 : vector<16x16xf32> to vector<16x16xbf16>
    %84 = arith.truncf %66 : vector<8x16xf32> to vector<8x16xbf16>
    %cst_35 = arith.constant dense<0.000000e+00> : vector<16x8xf32>
    %85 = tpu.matmul %83, %84, %cst_35 {dimension_numbers = #tpu.dot_dimension_numbers<[1], [1], [0], [0], [0, 0, 1, 0], [], []>} : vector<16x16xbf16>, vector<8x16xbf16>, vector<16x8xf32> -> vector<16x8xf32>
    %86 = vector.extract_strided_slice %41 {offsets = [16, 0], sizes = [8, 16], strides = [1, 1]} : vector<96x16xf32> to vector<8x16xf32>
    %87 = vector.extract_strided_slice %41 {offsets = [48, 0], sizes = [8, 16], strides = [1, 1]} : vector<96x16xf32> to vector<8x16xf32>
    %88 = vector.extract_strided_slice %41 {offsets = [80, 0], sizes = [8, 16], strides = [1, 1]} : vector<96x16xf32> to vector<8x16xf32>
    %89 = arith.truncf %86 : vector<8x16xf32> to vector<8x16xbf16>
    %90 = arith.truncf %87 : vector<8x16xf32> to vector<8x16xbf16>
    %cst_36 = arith.constant dense<0.000000e+00> : vector<16x16xf32>
    %91 = tpu.matmul %89, %90, %cst_36 {dimension_numbers = #tpu.dot_dimension_numbers<[0], [0], [1], [1], [0, 1, 1, 1], [], []>} : vector<8x16xbf16>, vector<8x16xbf16>, vector<16x16xf32> -> vector<16x16xf32>
    %cst_37 = arith.constant 0.353553385 : f32
    %92 = vector.broadcast %cst_37 : f32 to vector<16x16xf32>
    %93 = arith.mulf %91, %92 : vector<16x16xf32>
    %94 = arith.addf %93, %25 : vector<16x16xf32>
    %cst_38 = arith.constant dense<0xFF800000> : vector<16xf32>
    %95 = vector.multi_reduction <maximumf>, %94, %cst_38 [1] : vector<16x16xf32> to vector<16xf32>
    %96 = vector.shape_cast %95 : vector<16xf32> to vector<16x1xf32>
    %97 = vector.broadcast %96 : vector<16x1xf32> to vector<16x16xf32>
    %98 = arith.subf %94, %97 : vector<16x16xf32>
    %99 = math.exp %98 : vector<16x16xf32>
    %cst_39 = arith.constant dense<0.000000e+00> : vector<16xf32>
    %100 = vector.multi_reduction <add>, %99, %cst_39 [1] : vector<16x16xf32> to vector<16xf32>
    %101 = vector.shape_cast %100 : vector<16xf32> to vector<16x1xf32>
    %102 = tpu.reciprocal %101 {approx = true} : vector<16x1xf32> -> vector<16x1xf32>
    %103 = vector.broadcast %102 : vector<16x1xf32> to vector<16x16xf32>
    %104 = arith.mulf %99, %103 : vector<16x16xf32>
    %105 = arith.truncf %104 : vector<16x16xf32> to vector<16x16xbf16>
    %106 = arith.truncf %88 : vector<8x16xf32> to vector<8x16xbf16>
    %cst_40 = arith.constant dense<0.000000e+00> : vector<16x8xf32>
    %107 = tpu.matmul %105, %106, %cst_40 {dimension_numbers = #tpu.dot_dimension_numbers<[1], [1], [0], [0], [0, 0, 1, 0], [], []>} : vector<16x16xbf16>, vector<8x16xbf16>, vector<16x8xf32> -> vector<16x8xf32>
    %108 = vector.extract_strided_slice %41 {offsets = [24, 0], sizes = [8, 16], strides = [1, 1]} : vector<96x16xf32> to vector<8x16xf32>
    %109 = vector.extract_strided_slice %41 {offsets = [56, 0], sizes = [8, 16], strides = [1, 1]} : vector<96x16xf32> to vector<8x16xf32>
    %110 = vector.extract_strided_slice %41 {offsets = [88, 0], sizes = [8, 16], strides = [1, 1]} : vector<96x16xf32> to vector<8x16xf32>
    %111 = arith.truncf %108 : vector<8x16xf32> to vector<8x16xbf16>
    %112 = arith.truncf %109 : vector<8x16xf32> to vector<8x16xbf16>
    %cst_41 = arith.constant dense<0.000000e+00> : vector<16x16xf32>
    %113 = tpu.matmul %111, %112, %cst_41 {dimension_numbers = #tpu.dot_dimension_numbers<[0], [0], [1], [1], [0, 1, 1, 1], [], []>} : vector<8x16xbf16>, vector<8x16xbf16>, vector<16x16xf32> -> vector<16x16xf32>
    %cst_42 = arith.constant 0.353553385 : f32
    %114 = vector.broadcast %cst_42 : f32 to vector<16x16xf32>
    %115 = arith.mulf %113, %114 : vector<16x16xf32>
    %116 = arith.addf %115, %25 : vector<16x16xf32>
    %cst_43 = arith.constant dense<0xFF800000> : vector<16xf32>
    %117 = vector.multi_reduction <maximumf>, %116, %cst_43 [1] : vector<16x16xf32> to vector<16xf32>
    %118 = vector.shape_cast %117 : vector<16xf32> to vector<16x1xf32>
    %119 = vector.broadcast %118 : vector<16x1xf32> to vector<16x16xf32>
    %120 = arith.subf %116, %119 : vector<16x16xf32>
    %121 = math.exp %120 : vector<16x16xf32>
    %cst_44 = arith.constant dense<0.000000e+00> : vector<16xf32>
    %122 = vector.multi_reduction <add>, %121, %cst_44 [1] : vector<16x16xf32> to vector<16xf32>
    %123 = vector.shape_cast %122 : vector<16xf32> to vector<16x1xf32>
    %124 = tpu.reciprocal %123 {approx = true} : vector<16x1xf32> -> vector<16x1xf32>
    %125 = vector.broadcast %124 : vector<16x1xf32> to vector<16x16xf32>
    %126 = arith.mulf %121, %125 : vector<16x16xf32>
    %127 = arith.truncf %126 : vector<16x16xf32> to vector<16x16xbf16>
    %128 = arith.truncf %110 : vector<8x16xf32> to vector<8x16xbf16>
    %cst_45 = arith.constant dense<0.000000e+00> : vector<16x8xf32>
    %129 = tpu.matmul %127, %128, %cst_45 {dimension_numbers = #tpu.dot_dimension_numbers<[1], [1], [0], [0], [0, 0, 1, 0], [], []>} : vector<16x16xbf16>, vector<8x16xbf16>, vector<16x8xf32> -> vector<16x8xf32>
    %130 = tpu.concatenate %63, %85, %107, %129 in 1 : vector<16x8xf32>, vector<16x8xf32>, vector<16x8xf32>, vector<16x8xf32> -> vector<16x32xf32>
    %131 = arith.truncf %130 : vector<16x32xf32> to vector<16x32xbf16>
    %cst_46 = arith.constant dense<0.000000e+00> : vector<16x32xf32>
    %132 = tpu.matmul %131, %27, %cst_46 {dimension_numbers = #tpu.dot_dimension_numbers<[1], [0], [0], [1], [0, 0, 1, 1], [], []>} : vector<16x32xbf16>, vector<32x32xbf16>, vector<16x32xf32> -> vector<16x32xf32>
    %133 = vector.broadcast %31 : vector<1x32xf32> to vector<16x32xf32>
    %134 = arith.addf %132, %133 : vector<16x32xf32>
    %135 = arith.addf %134, %24 : vector<16x32xf32>
    %cst_47 = arith.constant dense<0.000000e+00> : vector<16xf32>
    %136 = vector.multi_reduction <add>, %135, %cst_47 [1] : vector<16x32xf32> to vector<16xf32>
    %137 = vector.shape_cast %136 : vector<16xf32> to vector<16x1xf32>
    %cst_48 = arith.constant 3.200000e+01 : f32
    %138 = vector.broadcast %cst_48 : f32 to vector<16x1xf32>
    %139 = arith.divf %137, %138 : vector<16x1xf32>
    %140 = vector.broadcast %139 : vector<16x1xf32> to vector<16x32xf32>
    %141 = arith.subf %135, %140 : vector<16x32xf32>
    %142 = arith.mulf %141, %141 : vector<16x32xf32>
    %cst_49 = arith.constant dense<0.000000e+00> : vector<16xf32>
    %143 = vector.multi_reduction <add>, %142, %cst_49 [1] : vector<16x32xf32> to vector<16xf32>
    %144 = vector.shape_cast %143 : vector<16xf32> to vector<16x1xf32>
    %cst_50 = arith.constant 3.200000e+01 : f32
    %145 = vector.broadcast %cst_50 : f32 to vector<16x1xf32>
    %146 = arith.divf %144, %145 : vector<16x1xf32>
    %147 = vector.broadcast %139 : vector<16x1xf32> to vector<16x32xf32>
    %148 = arith.subf %135, %147 : vector<16x32xf32>
    %cst_51 = arith.constant 9.99999974E-6 : f32
    %149 = vector.broadcast %cst_51 : f32 to vector<16x1xf32>
    %150 = arith.addf %146, %149 : vector<16x1xf32>
    %151 = math.rsqrt %150 : vector<16x1xf32>
    %152 = vector.broadcast %151 : vector<16x1xf32> to vector<16x32xf32>
    %153 = arith.mulf %148, %152 : vector<16x32xf32>
    %154 = vector.broadcast %32 : vector<1x32xf32> to vector<16x32xf32>
    %155 = arith.mulf %153, %154 : vector<16x32xf32>
    %156 = vector.broadcast %33 : vector<1x32xf32> to vector<16x32xf32>
    %157 = arith.addf %155, %156 : vector<16x32xf32>
    %158 = arith.truncf %157 : vector<16x32xf32> to vector<16x32xbf16>
    %cst_52 = arith.constant dense<0.000000e+00> : vector<16x64xf32>
    %159 = tpu.matmul %158, %29, %cst_52 {dimension_numbers = #tpu.dot_dimension_numbers<[1], [0], [0], [1], [0, 0, 1, 1], [], []>} : vector<16x32xbf16>, vector<32x64xbf16>, vector<16x64xf32> -> vector<16x64xf32>
    %160 = vector.broadcast %34 : vector<1x64xf32> to vector<16x64xf32>
    %161 = arith.addf %159, %160 : vector<16x64xf32>
    %cst_53 = arith.constant 5.000000e-01 : f32
    %162 = vector.broadcast %cst_53 : f32 to vector<16x64xf32>
    %163 = arith.mulf %162, %161 : vector<16x64xf32>
    %cst_54 = arith.constant 0.707106769 : f32
    %164 = vector.broadcast %cst_54 : f32 to vector<16x64xf32>
    %165 = arith.mulf %161, %164 : vector<16x64xf32>
    %166 = math.erf %165 : vector<16x64xf32>
    %cst_55 = arith.constant 1.000000e+00 : f32
    %167 = vector.broadcast %cst_55 : f32 to vector<16x64xf32>
    %168 = arith.addf %167, %166 : vector<16x64xf32>
    %169 = arith.mulf %163, %168 : vector<16x64xf32>
    %170 = arith.truncf %169 : vector<16x64xf32> to vector<16x64xbf16>
    %cst_56 = arith.constant dense<0.000000e+00> : vector<16x32xf32>
    %171 = tpu.matmul %170, %28, %cst_56 {dimension_numbers = #tpu.dot_dimension_numbers<[1], [0], [0], [1], [0, 0, 1, 1], [], []>} : vector<16x64xbf16>, vector<64x32xbf16>, vector<16x32xf32> -> vector<16x32xf32>
    %172 = vector.broadcast %35 : vector<1x32xf32> to vector<16x32xf32>
    %173 = arith.addf %171, %172 : vector<16x32xf32>
    %174 = arith.addf %173, %157 : vector<16x32xf32>
    %cst_57 = arith.constant dense<0.000000e+00> : vector<16xf32>
    %175 = vector.multi_reduction <add>, %174, %cst_57 [1] : vector<16x32xf32> to vector<16xf32>
    %176 = vector.shape_cast %175 : vector<16xf32> to vector<16x1xf32>
    %cst_58 = arith.constant 3.200000e+01 : f32
    %177 = vector.broadcast %cst_58 : f32 to vector<16x1xf32>
    %178 = arith.divf %176, %177 : vector<16x1xf32>
    %179 = vector.broadcast %178 : vector<16x1xf32> to vector<16x32xf32>
    %180 = arith.subf %174, %179 : vector<16x32xf32>
    %181 = arith.mulf %180, %180 : vector<16x32xf32>
    %cst_59 = arith.constant dense<0.000000e+00> : vector<16xf32>
    %182 = vector.multi_reduction <add>, %181, %cst_59 [1] : vector<16x32xf32> to vector<16xf32>
    %183 = vector.shape_cast %182 : vector<16xf32> to vector<16x1xf32>
    %cst_60 = arith.constant 3.200000e+01 : f32
    %184 = vector.broadcast %cst_60 : f32 to vector<16x1xf32>
    %185 = arith.divf %183, %184 : vector<16x1xf32>
    %186 = vector.broadcast %178 : vector<16x1xf32> to vector<16x32xf32>
    %187 = arith.subf %174, %186 : vector<16x32xf32>
    %cst_61 = arith.constant 9.99999974E-6 : f32
    %188 = vector.broadcast %cst_61 : f32 to vector<16x1xf32>
    %189 = arith.addf %185, %188 : vector<16x1xf32>
    %190 = math.rsqrt %189 : vector<16x1xf32>
    %191 = vector.broadcast %190 : vector<16x1xf32> to vector<16x32xf32>
    %192 = arith.mulf %187, %191 : vector<16x32xf32>
    %193 = vector.broadcast %36 : vector<1x32xf32> to vector<16x32xf32>
    %194 = arith.mulf %192, %193 : vector<16x32xf32>
    %195 = vector.broadcast %37 : vector<1x32xf32> to vector<16x32xf32>
    %196 = arith.addf %194, %195 : vector<16x32xf32>
    %c96 = arith.constant 96 : index
    %c0_62 = arith.constant 0 : index
    %197 = vector.load %arg2[%c96, %c0_62] : memref<448x32xbf16, #tpu.memory_space<vmem>>, vector<96x32xbf16>
    %c224 = arith.constant 224 : index
    %c0_63 = arith.constant 0 : index
    %198 = vector.load %arg2[%c224, %c0_63] : memref<448x32xbf16, #tpu.memory_space<vmem>>, vector<32x32xbf16>
    %c320 = arith.constant 320 : index
    %c0_64 = arith.constant 0 : index
    %199 = vector.load %arg2[%c320, %c0_64] : memref<448x32xbf16, #tpu.memory_space<vmem>>, vector<64x32xbf16>
    %c32 = arith.constant 32 : index
    %c0_65 = arith.constant 0 : index
    %200 = vector.load %arg3[%c32, %c0_65] : memref<64x64xbf16, #tpu.memory_space<vmem>>, vector<32x64xbf16>
    %c96_66 = arith.constant 96 : index
    %c0_67 = arith.constant 0 : index
    %201 = vector.load %arg4[%c96_66, %c0_67] : memref<192x1xf32, #tpu.memory_space<vmem>>, vector<96x1xf32>
    %c10 = arith.constant 10 : index
    %c0_68 = arith.constant 0 : index
    %202 = vector.load %arg5[%c10, %c0_68] : memref<20x128xf32, #tpu.memory_space<vmem>>, vector<1x32xf32>
    %c11 = arith.constant 11 : index
    %c0_69 = arith.constant 0 : index
    %203 = vector.load %arg5[%c11, %c0_69] : memref<20x128xf32, #tpu.memory_space<vmem>>, vector<1x32xf32>
    %c12 = arith.constant 12 : index
    %c0_70 = arith.constant 0 : index
    %204 = vector.load %arg5[%c12, %c0_70] : memref<20x128xf32, #tpu.memory_space<vmem>>, vector<1x32xf32>
    %c13 = arith.constant 13 : index
    %c0_71 = arith.constant 0 : index
    %205 = vector.load %arg5[%c13, %c0_71] : memref<20x128xf32, #tpu.memory_space<vmem>>, vector<1x64xf32>
    %c14 = arith.constant 14 : index
    %c0_72 = arith.constant 0 : index
    %206 = vector.load %arg5[%c14, %c0_72] : memref<20x128xf32, #tpu.memory_space<vmem>>, vector<1x32xf32>
    %c15 = arith.constant 15 : index
    %c0_73 = arith.constant 0 : index
    %207 = vector.load %arg5[%c15, %c0_73] : memref<20x128xf32, #tpu.memory_space<vmem>>, vector<1x32xf32>
    %c16 = arith.constant 16 : index
    %c0_74 = arith.constant 0 : index
    %208 = vector.load %arg5[%c16, %c0_74] : memref<20x128xf32, #tpu.memory_space<vmem>>, vector<1x32xf32>
    %209 = arith.truncf %196 : vector<16x32xf32> to vector<16x32xbf16>
    %cst_75 = arith.constant dense<0.000000e+00> : vector<96x16xf32>
    %210 = tpu.matmul %197, %209, %cst_75 {dimension_numbers = #tpu.dot_dimension_numbers<[1], [1], [0], [0], [0, 0, 1, 0], [], []>} : vector<96x32xbf16>, vector<16x32xbf16>, vector<96x16xf32> -> vector<96x16xf32>
    %211 = vector.broadcast %201 : vector<96x1xf32> to vector<96x16xf32>
    %212 = arith.addf %210, %211 : vector<96x16xf32>
    %213 = vector.extract_strided_slice %212 {offsets = [0, 0], sizes = [8, 16], strides = [1, 1]} : vector<96x16xf32> to vector<8x16xf32>
    %214 = vector.extract_strided_slice %212 {offsets = [32, 0], sizes = [8, 16], strides = [1, 1]} : vector<96x16xf32> to vector<8x16xf32>
    %215 = vector.extract_strided_slice %212 {offsets = [64, 0], sizes = [8, 16], strides = [1, 1]} : vector<96x16xf32> to vector<8x16xf32>
    %216 = arith.truncf %213 : vector<8x16xf32> to vector<8x16xbf16>
    %217 = arith.truncf %214 : vector<8x16xf32> to vector<8x16xbf16>
    %cst_76 = arith.constant dense<0.000000e+00> : vector<16x16xf32>
    %218 = tpu.matmul %216, %217, %cst_76 {dimension_numbers = #tpu.dot_dimension_numbers<[0], [0], [1], [1], [0, 1, 1, 1], [], []>} : vector<8x16xbf16>, vector<8x16xbf16>, vector<16x16xf32> -> vector<16x16xf32>
    %cst_77 = arith.constant 0.353553385 : f32
    %219 = vector.broadcast %cst_77 : f32 to vector<16x16xf32>
    %220 = arith.mulf %218, %219 : vector<16x16xf32>
    %221 = arith.addf %220, %25 : vector<16x16xf32>
    %cst_78 = arith.constant dense<0xFF800000> : vector<16xf32>
    %222 = vector.multi_reduction <maximumf>, %221, %cst_78 [1] : vector<16x16xf32> to vector<16xf32>
    %223 = vector.shape_cast %222 : vector<16xf32> to vector<16x1xf32>
    %224 = vector.broadcast %223 : vector<16x1xf32> to vector<16x16xf32>
    %225 = arith.subf %221, %224 : vector<16x16xf32>
    %226 = math.exp %225 : vector<16x16xf32>
    %cst_79 = arith.constant dense<0.000000e+00> : vector<16xf32>
    %227 = vector.multi_reduction <add>, %226, %cst_79 [1] : vector<16x16xf32> to vector<16xf32>
    %228 = vector.shape_cast %227 : vector<16xf32> to vector<16x1xf32>
    %229 = tpu.reciprocal %228 {approx = true} : vector<16x1xf32> -> vector<16x1xf32>
    %230 = vector.broadcast %229 : vector<16x1xf32> to vector<16x16xf32>
    %231 = arith.mulf %226, %230 : vector<16x16xf32>
    %232 = arith.truncf %231 : vector<16x16xf32> to vector<16x16xbf16>
    %233 = arith.truncf %215 : vector<8x16xf32> to vector<8x16xbf16>
    %cst_80 = arith.constant dense<0.000000e+00> : vector<16x8xf32>
    %234 = tpu.matmul %232, %233, %cst_80 {dimension_numbers = #tpu.dot_dimension_numbers<[1], [1], [0], [0], [0, 0, 1, 0], [], []>} : vector<16x16xbf16>, vector<8x16xbf16>, vector<16x8xf32> -> vector<16x8xf32>
    %235 = vector.extract_strided_slice %212 {offsets = [8, 0], sizes = [8, 16], strides = [1, 1]} : vector<96x16xf32> to vector<8x16xf32>
    %236 = vector.extract_strided_slice %212 {offsets = [40, 0], sizes = [8, 16], strides = [1, 1]} : vector<96x16xf32> to vector<8x16xf32>
    %237 = vector.extract_strided_slice %212 {offsets = [72, 0], sizes = [8, 16], strides = [1, 1]} : vector<96x16xf32> to vector<8x16xf32>
    %238 = arith.truncf %235 : vector<8x16xf32> to vector<8x16xbf16>
    %239 = arith.truncf %236 : vector<8x16xf32> to vector<8x16xbf16>
    %cst_81 = arith.constant dense<0.000000e+00> : vector<16x16xf32>
    %240 = tpu.matmul %238, %239, %cst_81 {dimension_numbers = #tpu.dot_dimension_numbers<[0], [0], [1], [1], [0, 1, 1, 1], [], []>} : vector<8x16xbf16>, vector<8x16xbf16>, vector<16x16xf32> -> vector<16x16xf32>
    %cst_82 = arith.constant 0.353553385 : f32
    %241 = vector.broadcast %cst_82 : f32 to vector<16x16xf32>
    %242 = arith.mulf %240, %241 : vector<16x16xf32>
    %243 = arith.addf %242, %25 : vector<16x16xf32>
    %cst_83 = arith.constant dense<0xFF800000> : vector<16xf32>
    %244 = vector.multi_reduction <maximumf>, %243, %cst_83 [1] : vector<16x16xf32> to vector<16xf32>
    %245 = vector.shape_cast %244 : vector<16xf32> to vector<16x1xf32>
    %246 = vector.broadcast %245 : vector<16x1xf32> to vector<16x16xf32>
    %247 = arith.subf %243, %246 : vector<16x16xf32>
    %248 = math.exp %247 : vector<16x16xf32>
    %cst_84 = arith.constant dense<0.000000e+00> : vector<16xf32>
    %249 = vector.multi_reduction <add>, %248, %cst_84 [1] : vector<16x16xf32> to vector<16xf32>
    %250 = vector.shape_cast %249 : vector<16xf32> to vector<16x1xf32>
    %251 = tpu.reciprocal %250 {approx = true} : vector<16x1xf32> -> vector<16x1xf32>
    %252 = vector.broadcast %251 : vector<16x1xf32> to vector<16x16xf32>
    %253 = arith.mulf %248, %252 : vector<16x16xf32>
    %254 = arith.truncf %253 : vector<16x16xf32> to vector<16x16xbf16>
    %255 = arith.truncf %237 : vector<8x16xf32> to vector<8x16xbf16>
    %cst_85 = arith.constant dense<0.000000e+00> : vector<16x8xf32>
    %256 = tpu.matmul %254, %255, %cst_85 {dimension_numbers = #tpu.dot_dimension_numbers<[1], [1], [0], [0], [0, 0, 1, 0], [], []>} : vector<16x16xbf16>, vector<8x16xbf16>, vector<16x8xf32> -> vector<16x8xf32>
    %257 = vector.extract_strided_slice %212 {offsets = [16, 0], sizes = [8, 16], strides = [1, 1]} : vector<96x16xf32> to vector<8x16xf32>
    %258 = vector.extract_strided_slice %212 {offsets = [48, 0], sizes = [8, 16], strides = [1, 1]} : vector<96x16xf32> to vector<8x16xf32>
    %259 = vector.extract_strided_slice %212 {offsets = [80, 0], sizes = [8, 16], strides = [1, 1]} : vector<96x16xf32> to vector<8x16xf32>
    %260 = arith.truncf %257 : vector<8x16xf32> to vector<8x16xbf16>
    %261 = arith.truncf %258 : vector<8x16xf32> to vector<8x16xbf16>
    %cst_86 = arith.constant dense<0.000000e+00> : vector<16x16xf32>
    %262 = tpu.matmul %260, %261, %cst_86 {dimension_numbers = #tpu.dot_dimension_numbers<[0], [0], [1], [1], [0, 1, 1, 1], [], []>} : vector<8x16xbf16>, vector<8x16xbf16>, vector<16x16xf32> -> vector<16x16xf32>
    %cst_87 = arith.constant 0.353553385 : f32
    %263 = vector.broadcast %cst_87 : f32 to vector<16x16xf32>
    %264 = arith.mulf %262, %263 : vector<16x16xf32>
    %265 = arith.addf %264, %25 : vector<16x16xf32>
    %cst_88 = arith.constant dense<0xFF800000> : vector<16xf32>
    %266 = vector.multi_reduction <maximumf>, %265, %cst_88 [1] : vector<16x16xf32> to vector<16xf32>
    %267 = vector.shape_cast %266 : vector<16xf32> to vector<16x1xf32>
    %268 = vector.broadcast %267 : vector<16x1xf32> to vector<16x16xf32>
    %269 = arith.subf %265, %268 : vector<16x16xf32>
    %270 = math.exp %269 : vector<16x16xf32>
    %cst_89 = arith.constant dense<0.000000e+00> : vector<16xf32>
    %271 = vector.multi_reduction <add>, %270, %cst_89 [1] : vector<16x16xf32> to vector<16xf32>
    %272 = vector.shape_cast %271 : vector<16xf32> to vector<16x1xf32>
    %273 = tpu.reciprocal %272 {approx = true} : vector<16x1xf32> -> vector<16x1xf32>
    %274 = vector.broadcast %273 : vector<16x1xf32> to vector<16x16xf32>
    %275 = arith.mulf %270, %274 : vector<16x16xf32>
    %276 = arith.truncf %275 : vector<16x16xf32> to vector<16x16xbf16>
    %277 = arith.truncf %259 : vector<8x16xf32> to vector<8x16xbf16>
    %cst_90 = arith.constant dense<0.000000e+00> : vector<16x8xf32>
    %278 = tpu.matmul %276, %277, %cst_90 {dimension_numbers = #tpu.dot_dimension_numbers<[1], [1], [0], [0], [0, 0, 1, 0], [], []>} : vector<16x16xbf16>, vector<8x16xbf16>, vector<16x8xf32> -> vector<16x8xf32>
    %279 = vector.extract_strided_slice %212 {offsets = [24, 0], sizes = [8, 16], strides = [1, 1]} : vector<96x16xf32> to vector<8x16xf32>
    %280 = vector.extract_strided_slice %212 {offsets = [56, 0], sizes = [8, 16], strides = [1, 1]} : vector<96x16xf32> to vector<8x16xf32>
    %281 = vector.extract_strided_slice %212 {offsets = [88, 0], sizes = [8, 16], strides = [1, 1]} : vector<96x16xf32> to vector<8x16xf32>
    %282 = arith.truncf %279 : vector<8x16xf32> to vector<8x16xbf16>
    %283 = arith.truncf %280 : vector<8x16xf32> to vector<8x16xbf16>
    %cst_91 = arith.constant dense<0.000000e+00> : vector<16x16xf32>
    %284 = tpu.matmul %282, %283, %cst_91 {dimension_numbers = #tpu.dot_dimension_numbers<[0], [0], [1], [1], [0, 1, 1, 1], [], []>} : vector<8x16xbf16>, vector<8x16xbf16>, vector<16x16xf32> -> vector<16x16xf32>
    %cst_92 = arith.constant 0.353553385 : f32
    %285 = vector.broadcast %cst_92 : f32 to vector<16x16xf32>
    %286 = arith.mulf %284, %285 : vector<16x16xf32>
    %287 = arith.addf %286, %25 : vector<16x16xf32>
    %cst_93 = arith.constant dense<0xFF800000> : vector<16xf32>
    %288 = vector.multi_reduction <maximumf>, %287, %cst_93 [1] : vector<16x16xf32> to vector<16xf32>
    %289 = vector.shape_cast %288 : vector<16xf32> to vector<16x1xf32>
    %290 = vector.broadcast %289 : vector<16x1xf32> to vector<16x16xf32>
    %291 = arith.subf %287, %290 : vector<16x16xf32>
    %292 = math.exp %291 : vector<16x16xf32>
    %cst_94 = arith.constant dense<0.000000e+00> : vector<16xf32>
    %293 = vector.multi_reduction <add>, %292, %cst_94 [1] : vector<16x16xf32> to vector<16xf32>
    %294 = vector.shape_cast %293 : vector<16xf32> to vector<16x1xf32>
    %295 = tpu.reciprocal %294 {approx = true} : vector<16x1xf32> -> vector<16x1xf32>
    %296 = vector.broadcast %295 : vector<16x1xf32> to vector<16x16xf32>
    %297 = arith.mulf %292, %296 : vector<16x16xf32>
    %298 = arith.truncf %297 : vector<16x16xf32> to vector<16x16xbf16>
    %299 = arith.truncf %281 : vector<8x16xf32> to vector<8x16xbf16>
    %cst_95 = arith.constant dense<0.000000e+00> : vector<16x8xf32>
    %300 = tpu.matmul %298, %299, %cst_95 {dimension_numbers = #tpu.dot_dimension_numbers<[1], [1], [0], [0], [0, 0, 1, 0], [], []>} : vector<16x16xbf16>, vector<8x16xbf16>, vector<16x8xf32> -> vector<16x8xf32>
    %301 = tpu.concatenate %234, %256, %278, %300 in 1 : vector<16x8xf32>, vector<16x8xf32>, vector<16x8xf32>, vector<16x8xf32> -> vector<16x32xf32>
    %302 = arith.truncf %301 : vector<16x32xf32> to vector<16x32xbf16>
    %cst_96 = arith.constant dense<0.000000e+00> : vector<16x32xf32>
    %303 = tpu.matmul %302, %198, %cst_96 {dimension_numbers = #tpu.dot_dimension_numbers<[1], [0], [0], [1], [0, 0, 1, 1], [], []>} : vector<16x32xbf16>, vector<32x32xbf16>, vector<16x32xf32> -> vector<16x32xf32>
    %304 = vector.broadcast %202 : vector<1x32xf32> to vector<16x32xf32>
    %305 = arith.addf %303, %304 : vector<16x32xf32>
    %306 = arith.addf %305, %196 : vector<16x32xf32>
    %cst_97 = arith.constant dense<0.000000e+00> : vector<16xf32>
    %307 = vector.multi_reduction <add>, %306, %cst_97 [1] : vector<16x32xf32> to vector<16xf32>
    %308 = vector.shape_cast %307 : vector<16xf32> to vector<16x1xf32>
    %cst_98 = arith.constant 3.200000e+01 : f32
    %309 = vector.broadcast %cst_98 : f32 to vector<16x1xf32>
    %310 = arith.divf %308, %309 : vector<16x1xf32>
    %311 = vector.broadcast %310 : vector<16x1xf32> to vector<16x32xf32>
    %312 = arith.subf %306, %311 : vector<16x32xf32>
    %313 = arith.mulf %312, %312 : vector<16x32xf32>
    %cst_99 = arith.constant dense<0.000000e+00> : vector<16xf32>
    %314 = vector.multi_reduction <add>, %313, %cst_99 [1] : vector<16x32xf32> to vector<16xf32>
    %315 = vector.shape_cast %314 : vector<16xf32> to vector<16x1xf32>
    %cst_100 = arith.constant 3.200000e+01 : f32
    %316 = vector.broadcast %cst_100 : f32 to vector<16x1xf32>
    %317 = arith.divf %315, %316 : vector<16x1xf32>
    %318 = vector.broadcast %310 : vector<16x1xf32> to vector<16x32xf32>
    %319 = arith.subf %306, %318 : vector<16x32xf32>
    %cst_101 = arith.constant 9.99999974E-6 : f32
    %320 = vector.broadcast %cst_101 : f32 to vector<16x1xf32>
    %321 = arith.addf %317, %320 : vector<16x1xf32>
    %322 = math.rsqrt %321 : vector<16x1xf32>
    %323 = vector.broadcast %322 : vector<16x1xf32> to vector<16x32xf32>
    %324 = arith.mulf %319, %323 : vector<16x32xf32>
    %325 = vector.broadcast %203 : vector<1x32xf32> to vector<16x32xf32>
    %326 = arith.mulf %324, %325 : vector<16x32xf32>
    %327 = vector.broadcast %204 : vector<1x32xf32> to vector<16x32xf32>
    %328 = arith.addf %326, %327 : vector<16x32xf32>
    %329 = arith.truncf %328 : vector<16x32xf32> to vector<16x32xbf16>
    %cst_102 = arith.constant dense<0.000000e+00> : vector<16x64xf32>
    %330 = tpu.matmul %329, %200, %cst_102 {dimension_numbers = #tpu.dot_dimension_numbers<[1], [0], [0], [1], [0, 0, 1, 1], [], []>} : vector<16x32xbf16>, vector<32x64xbf16>, vector<16x64xf32> -> vector<16x64xf32>
    %331 = vector.broadcast %205 : vector<1x64xf32> to vector<16x64xf32>
    %332 = arith.addf %330, %331 : vector<16x64xf32>
    %cst_103 = arith.constant 5.000000e-01 : f32
    %333 = vector.broadcast %cst_103 : f32 to vector<16x64xf32>
    %334 = arith.mulf %333, %332 : vector<16x64xf32>
    %cst_104 = arith.constant 0.707106769 : f32
    %335 = vector.broadcast %cst_104 : f32 to vector<16x64xf32>
    %336 = arith.mulf %332, %335 : vector<16x64xf32>
    %337 = math.erf %336 : vector<16x64xf32>
    %cst_105 = arith.constant 1.000000e+00 : f32
    %338 = vector.broadcast %cst_105 : f32 to vector<16x64xf32>
    %339 = arith.addf %338, %337 : vector<16x64xf32>
    %340 = arith.mulf %334, %339 : vector<16x64xf32>
    %341 = arith.truncf %340 : vector<16x64xf32> to vector<16x64xbf16>
    %cst_106 = arith.constant dense<0.000000e+00> : vector<16x32xf32>
    %342 = tpu.matmul %341, %199, %cst_106 {dimension_numbers = #tpu.dot_dimension_numbers<[1], [0], [0], [1], [0, 0, 1, 1], [], []>} : vector<16x64xbf16>, vector<64x32xbf16>, vector<16x32xf32> -> vector<16x32xf32>
    %343 = vector.broadcast %206 : vector<1x32xf32> to vector<16x32xf32>
    %344 = arith.addf %342, %343 : vector<16x32xf32>
    %345 = arith.addf %344, %328 : vector<16x32xf32>
    %cst_107 = arith.constant dense<0.000000e+00> : vector<16xf32>
    %346 = vector.multi_reduction <add>, %345, %cst_107 [1] : vector<16x32xf32> to vector<16xf32>
    %347 = vector.shape_cast %346 : vector<16xf32> to vector<16x1xf32>
    %cst_108 = arith.constant 3.200000e+01 : f32
    %348 = vector.broadcast %cst_108 : f32 to vector<16x1xf32>
    %349 = arith.divf %347, %348 : vector<16x1xf32>
    %350 = vector.broadcast %349 : vector<16x1xf32> to vector<16x32xf32>
    %351 = arith.subf %345, %350 : vector<16x32xf32>
    %352 = arith.mulf %351, %351 : vector<16x32xf32>
    %cst_109 = arith.constant dense<0.000000e+00> : vector<16xf32>
    %353 = vector.multi_reduction <add>, %352, %cst_109 [1] : vector<16x32xf32> to vector<16xf32>
    %354 = vector.shape_cast %353 : vector<16xf32> to vector<16x1xf32>
    %cst_110 = arith.constant 3.200000e+01 : f32
    %355 = vector.broadcast %cst_110 : f32 to vector<16x1xf32>
    %356 = arith.divf %354, %355 : vector<16x1xf32>
    %357 = vector.broadcast %349 : vector<16x1xf32> to vector<16x32xf32>
    %358 = arith.subf %345, %357 : vector<16x32xf32>
    %cst_111 = arith.constant 9.99999974E-6 : f32
    %359 = vector.broadcast %cst_111 : f32 to vector<16x1xf32>
    %360 = arith.addf %356, %359 : vector<16x1xf32>
    %361 = math.rsqrt %360 : vector<16x1xf32>
    %362 = vector.broadcast %361 : vector<16x1xf32> to vector<16x32xf32>
    %363 = arith.mulf %358, %362 : vector<16x32xf32>
    %364 = vector.broadcast %207 : vector<1x32xf32> to vector<16x32xf32>
    %365 = arith.mulf %363, %364 : vector<16x32xf32>
    %366 = vector.broadcast %208 : vector<1x32xf32> to vector<16x32xf32>
    %367 = arith.addf %365, %366 : vector<16x32xf32>
    %368 = vector.extract_strided_slice %367 {offsets = [0, 0], sizes = [1, 32], strides = [1, 1]} : vector<16x32xf32> to vector<1x32xf32>
    %369 = vector.extract_strided_slice %367 {offsets = [8, 0], sizes = [1, 32], strides = [1, 1]} : vector<16x32xf32> to vector<1x32xf32>
    %370 = tpu.concatenate %368, %369 in 0 : vector<1x32xf32>, vector<1x32xf32> -> vector<2x32xf32>
    %c384 = arith.constant 384 : index
    %c0_112 = arith.constant 0 : index
    %371 = vector.load %arg2[%c384, %c0_112] : memref<448x32xbf16, #tpu.memory_space<vmem>>, vector<32x32xbf16>
    %372 = arith.truncf %370 : vector<2x32xf32> to vector<2x32xbf16>
    %cst_113 = arith.constant dense<0.000000e+00> : vector<2x32xf32>
    %373 = tpu.matmul %372, %371, %cst_113 {dimension_numbers = #tpu.dot_dimension_numbers<[1], [0], [0], [1], [0, 0, 1, 1], [], []>} : vector<2x32xbf16>, vector<32x32xbf16>, vector<2x32xf32> -> vector<2x32xf32>
    %c18 = arith.constant 18 : index
    %c0_114 = arith.constant 0 : index
    %374 = vector.load %arg5[%c18, %c0_114] : memref<20x128xf32, #tpu.memory_space<vmem>>, vector<1x32xf32>
    %375 = vector.broadcast %374 : vector<1x32xf32> to vector<2x32xf32>
    %376 = arith.addf %373, %375 : vector<2x32xf32>
    %c416 = arith.constant 416 : index
    %c0_115 = arith.constant 0 : index
    %377 = vector.load %arg2[%c416, %c0_115] : memref<448x32xbf16, #tpu.memory_space<vmem>>, vector<32x32xbf16>
    %378 = arith.truncf %376 : vector<2x32xf32> to vector<2x32xbf16>
    %cst_116 = arith.constant dense<0.000000e+00> : vector<2x32xf32>
    %379 = tpu.matmul %378, %377, %cst_116 {dimension_numbers = #tpu.dot_dimension_numbers<[1], [0], [0], [1], [0, 0, 1, 1], [], []>} : vector<2x32xbf16>, vector<32x32xbf16>, vector<2x32xf32> -> vector<2x32xf32>
    %c19 = arith.constant 19 : index
    %c0_117 = arith.constant 0 : index
    %380 = vector.load %arg5[%c19, %c0_117] : memref<20x128xf32, #tpu.memory_space<vmem>>, vector<1x32xf32>
    %381 = vector.broadcast %380 : vector<1x32xf32> to vector<2x32xf32>
    %382 = arith.addf %379, %381 : vector<2x32xf32>
    %cst_118 = arith.constant 0.000000e+00 : f32
    %383 = vector.broadcast %cst_118 : f32 to vector<2x64xf32>
    %384 = tpu.concatenate %376, %382, %383 in 1 : vector<2x32xf32>, vector<2x32xf32>, vector<2x64xf32> -> vector<2x128xf32>
    %cst_119 = arith.constant 0.000000e+00 : f32
    %385 = vector.broadcast %cst_119 : f32 to vector<6x128xf32>
    %386 = tpu.concatenate %384, %385 in 0 : vector<2x128xf32>, vector<6x128xf32> -> vector<8x128xf32>
    %c0_120 = arith.constant 0 : index
    %c0_121 = arith.constant 0 : index
    %387 = vector.load %arg6[%c0_120, %c0_121] : memref<8x128xf32, #tpu.memory_space<vmem>>, vector<8x128xf32>
    tpu.vector_store %arg6[%c0_120, %c0_121], %386 {strides = array<i32>} : memref<8x128xf32, #tpu.memory_space<vmem>>, vector<8x128xf32>,
    return
  }
}

</mosaic_0001>

<bundles_post_ra>
// kernel: transformer_final_forward.1
= control target key start
LH: loop header
LB: loop body
LE: loop exit
PB: predicated region body
PF: predicated region fallthrough
CT: control target
= control target key end

     0   :  { %vm28_vm0 = vcmask 261120   ;;  %v2976_v15 = vmov 0   ;;  %v2977_v39 = vmov 0.0   ;;  %vm2978_vm1 = vmmov 0   ;;  %s2979_s21 = smov 8   ;;  %s2980_s24 = smov 16   ;;  %s3574_s0 = inlined_call_operand.vmem [shape: f32[16,32], index: 0, kind: input, shape index: {}]   ;;  %s3575_s2 = inlined_call_operand.vmem [shape: bf16[448,32], index: 2, kind: input, shape index: {}]   ;;  %s3576_s4 = inlined_call_operand.vmem [shape: f32[192,1], index: 4, kind: input, shape index: {}]   ;;  %s3577_s5 = inlined_call_operand.vmem [shape: f32[20,128], index: 5, kind: input, shape index: {}]   ;;  %s3578_s1 = inlined_call_operand.vmem [shape: f32[16,16], index: 1, kind: input, shape index: {}]   ;;  %s3579_s3 = inlined_call_operand.vmem [shape: bf16[64,64], index: 3, kind: input, shape index: {}]   ;;  %s3580_s6 = inlined_call_operand.vmem [shape: f32[8,128], index: 6, kind: output, shape index: {}]  }
   0x1   :  { %v24_v0 = vld [vmem:[%s3574_s0] sm:$0xff]  ;;  %v25_v1 = vld [vmem:[%s3574_s0 + $0x8] sm:$0xff]  ;;  %2818 = vset.pattern.permute.xlu0 %v2976_v15  ;;  %2819 = vset.pattern.permute.xlu1 %v2976_v15  ;;  %v2852_v37 = vld [vmem:[%s3575_s2 + $0x10] sm:$0xff]   ;;  %vm332_vm2 = vcmask 1043456   ;;  %vm328_vm3 = vcmask 64512   ;;  %vm381_vm4 = vcmask 130048  }
   0x2   :  { %v29_v2 = vsel %vm28_vm0, %v24_v0, 0.0  ;;  %v32_v3 = vsel %vm28_vm0, %v25_v1, 0.0  ;;  %v2850_v14 = vld [vmem:[%s3575_s2] sm:$0xff]   ;;  %v2851_v36 = vld [vmem:[%s3575_s2 + $0x8] sm:$0xff]   ;;  %v2853_v38 = vld [vmem:[%s3575_s2 + $0x18] sm:$0xff]   ;;  %2627 = vmatprep.subr.bf16.mxu1 %v2977_v39  ;;  %2629 = vmatprep.mubr.msk.bf16.mxu1 %vm2978_vm1, %v2977_v39  ;;  %s2981_s0 = smov 24  }
   0x3   :  { %30 = vadd.xlane.f32.xlu0 %v29_v2  ;;  %2615 = vmatprep.mubr.msk.bf16.mxu0 %vm28_vm0, %v2850_v14  ;;  %v98_v16 = vld [vmem:[%s3576_s4] sm:$0xff]  ;;  %v2855_v57 = vld [vmem:[%s3575_s2 + $0x28] sm:$0xff]   ;;  %vm901_vm5 = vcmask 195584   ;;  %vm1105_vm6 = vcmask 523264   ;;  %vm2308_vm7 = vcmask 1040384   ;;  %vm2446_vm8 = vcmask 1041408  }
   0x4   :  { %v102_v17 = vld [vmem:[%s3576_s4 + $0x20] sm:$0xff]  ;;  %v3103_v63 = vld [vmem:[%s3578_s1 + $0x8] sm:$0xff] }
   0x5   :  { %v2453_v26 = vld [vmem:[%s3577_s5] ss:$0 sm:$0xff]  ;;  %v2454_v30 = vld [vmem:[%s3577_s5 + $0x1] ss:$0 sm:$0xff] }
   0x6   :  { %v2854_v56 = vld [vmem:[%s3575_s2 + $0x20] sm:$0xff]  }
   0x7   :  { %33 = vadd.xlane.f32.xlu0 %v32_v3  ;;  %v3098_v59 = vld [vmem:[%s3578_s1] sm:$0xff] }
  0x1d   :  { %120 = vperm.xlu0 %2818, %v98_v16  }
  0x90   :  { %v31_v4 = vpop.xlane.xlu0 %30 }
  0x91   :  { %v36_v5 = vmul.f32 0.03125, %v31_v4 }
  0x93   :  { %v38_v6 = vsub.f32 %v24_v0, %v36_v5 }
  0x94   :  { %v34_v7 = vpop.xlane.xlu0 %33 }
  0x95   :  { %v37_v8 = vmul.f32 0.03125, %v34_v7  ;;  %v40_v9 = vmul.f32 %v38_v6, %v38_v6  ;;  %v100_v7 = vld [vmem:[%s3576_s4 + $0x10] sm:$0xff] }
  0x97   :  { %v39_v10 = vsub.f32 %v25_v1, %v37_v8  ;;  %v42_v11 = vsel %vm28_vm0, %v40_v9, 0.0  ;;  %v101_v8 = vld [vmem:[%s3576_s4 + $0x18] sm:$0xff] }
  0x98   :  { %43 = vadd.xlane.f32.xlu1 %v42_v11 }
  0x99   :  { %v41_v12 = vmul.f32 %v39_v10, %v39_v10 }
  0x9b   :  { %v45_v13 = vsel %vm28_vm0, %v41_v12, 0.0 }
  0x9c   :  { %46 = vadd.xlane.f32.xlu1 %v45_v13  ;;  %v121_v40 = vpop.permute.xlu0 %120 }
  0xad   :  { %140 = vperm.xlu1 %2819, %v102_v17  }
 0x125   :  { %v44_v18 = vpop.xlane.xlu1 %43 }
 0x126   :  { %v48_v19 = vmul.f32 0.03125, %v44_v18 }
 0x128   :  { %v50_v20 = vadd.f32 1e-05, %v48_v19  ;;  %v103_v19 = vld [vmem:[%s3576_s4 + $0x28] sm:$0xff] }
 0x129   :  { %v47_v21 = vpop.xlane.xlu1 %46 }
 0x12a   :  { %2882 = vrsqrt.f32 %v50_v20  ;;  %v49_v22 = vmul.f32 0.03125, %v47_v21  ;;  %v104_v20 = vld [vmem:[%s3576_s4 + $0x30] sm:$0xff] }
 0x12c   :  { %v51_v23 = vadd.f32 1e-05, %v49_v22 }
 0x12d   :  { %v141_v47 = vpop.permute.xlu1 %140 }
 0x12e   :  { %2884 = vrsqrt.f32 %v51_v23  ;;  %v106_v23 = vld [vmem:[%s3576_s4 + $0x40] sm:$0xff] }
 0x134   :  { %v2883_v24 = vpop.eup %2882 }
 0x135   :  { %v54_v25 = vmul.f32 %v2883_v24, %v38_v6  ;;  %v99_v6 = vld [vmem:[%s3576_s4 + $0x8] sm:$0xff] }
 0x137   :  { %v60_v29 = vmul.f32 %v2453_v26, %v54_v25  ;;  %v105_v25 = vld [vmem:[%s3576_s4 + $0x38] sm:$0xff] }
 0x138   :  { %v2885_v27 = vpop.eup %2884 }
 0x139   :  { %v55_v28 = vmul.f32 %v2885_v27, %v39_v10  ;;  %v3044_v32 = vadd.f32 %v2454_v30, %v60_v29 }
 0x13b   :  { %v61_v31 = vmul.f32 %v2453_v26, %v55_v28 }
 0x13d   :  { %v3046_v33 = vadd.f32 %v2454_v30, %v61_v31 }
 0x13f   :  { %v117_v34 = vpack.c.bf16 %v3046_v33, %v3044_v32 }
 0x141   :  { %2809 = vmatprep.subr.msk.bf16.mxu0 %vm28_vm0, %v117_v34  ;;  %v227_v35 = vsel %vm28_vm0, %v117_v34, 0 }
 0x142   :  { %2614 = vmatpush3.bf16.xpose.msra.mxu0 %v227_v35 }
 0x143   :  { %2651 = vmatprep.subr.bf16.mxu0 %v2977_v39 }
 0x149   :  { %2616 = vmatmul.mubr.msk.bf16.vlgmr.msra.gmra.mrb[0].mxu0 %vm28_vm0, %v2851_v36 }
 0x14a   :  { %2619 = vmatprep.mubr.msk.bf16.mxu0 %vm28_vm0, %v2852_v37 }
 0x151   :  { %2620 = vmatmul.mubr.msk.bf16.gmra.mrb[4].mxu0 %vm28_vm0, %v2853_v38 }
 0x152   :  { %2623 = vmatprep.mubr.msk.bf16.mxu0 %vm28_vm0, %v2854_v56 }
 0x159   :  { %2624 = vmatmul.mubr.msk.bf16.gmra.mrb[8].mxu0 %vm28_vm0, %v2855_v57 }
 0x15a   :  { %2653 = vmatprep.mubr.msk.bf16.mxu0 %vm2978_vm1, %v2977_v39 }
 0x21c   :  { %v3068_v41 = vpop.f32.mrb[0].mxu0 }
 0x21d   :  { %v263_v42 = vpop.f32.mrb[1].mxu0 }
 0x21e   :  { %v264_v43 = vadd.f32 %v263_v42, %v121_v40  ;;  %v3070_v44 = vpop.f32.mrb[2].mxu0 }
 0x21f   :  { %v3072_v45 = vpop.f32.mrb[3].mxu0 }
 0x220   :  { %v310_v46 = vpack.c.bf16 %v264_v43, %v264_v43 }
 0x222   :  { %312 = vxpose.xlu1.c.b16.start.end [1/1] (short) (narrow) %v310_v46, 16 }
 0x224   :  { %v3074_v48 = vpop.f32.mrb[4].mxu0 }
 0x225   :  { %v279_v49 = vpop.f32.mrb[5].mxu0 }
 0x226   :  { %v3076_v50 = vpop.f32.mrb[6].mxu0  ;;  %v280_v51 = vadd.f32 %v279_v49, %v141_v47 }
 0x227   :  { %v3078_v52 = vpop.f32.mrb[7].mxu0 }
 0x228   :  { %v311_v53 = vpack.c.bf16 %v280_v51, %v280_v51 }
 0x22a   :  { %v334_v54 = vsel %vm332_vm2, %v311_v53, 0 }
 0x22b   :  { %2628 = vmatpush3.bf16.msra.mxu1 %v334_v54 }
 0x22c   :  { %2633 = vmatprep.subr.bf16.mxu1 %v2977_v39  ;;  %v3126_v21 = vpop.f32.mrb[8].mxu0 }
 0x22d   :  { %v295_v22 = vpop.f32.mrb[9].mxu0 }
 0x22e   :  { %v3131_v24 = vpop.f32.mrb[10].mxu0 }
 0x22f   :  { %v3136_v26 = vpop.f32.mrb[11].mxu0 }
 0x288   :  { %v320_v55 = vpop.trf.xlu1 }
 0x289   :  { %2630 = vmatmul.mubr.msk.bf16.vlgmr.msra.gmra.mrb[0].mxu1 %vm328_vm3, %v320_v55 }
 0x28a   :  { %2635 = vmatprep.mubr.msk.bf16.mxu1 %vm2978_vm1, %v2977_v39 }
 0x35c   :  { %v370_v58 = vpop.f32.mrb[0].mxu1 }
 0x35d   :  { %v377_v60 = vmul.f32 0.35355338, %v370_v58  ;;  %v2631_v61 = vpop.f32.mrb[1].mxu1 }
 0x35e   :  { %v373_v62 = vpop.f32.mrb[2].mxu1 }
 0x35f   :  { %v378_v0 = vmul.f32 0.35355338, %v373_v62  ;;  %v2632_v1 = vpop.f32.mrb[3].mxu1  ;;  %v379_v2 = vadd.f32 %v377_v60, %v3098_v59 }
 0x361   :  { %v382_v3 = vsel %vm381_vm4, %v379_v2, -inf  ;;  %v380_v4 = vadd.f32 %v378_v0, %v3103_v63 }
 0x362   :  { %383 = vmax.xlane.f32.xlu0 %v382_v3 }
 0x363   :  { %v385_v5 = vsel %vm381_vm4, %v380_v4, -inf }
 0x364   :  { %386 = vmax.xlane.f32.xlu1 %v385_v5 }
 0x375   :  { %125 = vperm.xlu1 %2819, %v99_v6  }
 0x378   :  { %130 = vperm.xlu0 %2818, %v100_v7  }
 0x379   :  { %135 = vperm.xlu1 %2819, %v101_v8  }
 0x3ef   :  { %v384_v9 = vpop.xlane.xlu0 %383 }
 0x3f0   :  { %v388_v10 = vsub.f32 %v379_v2, %v384_v9 }
 0x3f1   :  { %v387_v11 = vpop.xlane.xlu1 %386 }
 0x3f2   :  { %v390_v12 = vmul.f32 1.442695, %v388_v10  ;;  %v389_v13 = vsub.f32 %v380_v4, %v387_v11 }
 0x3f4   :  { %2886 = vpow2.f32 %v390_v12  ;;  %v392_v14 = vmul.f32 1.442695, %v389_v13 }
 0x3f5   :  { %v126_v27 = vpop.permute.xlu1 %125 }
 0x3f6   :  { %2888 = vpow2.f32 %v392_v14  ;;  %v267_v35 = vadd.f32 %v3072_v45, %v126_v27 }
 0x3f7   :  { %v131_v28 = vpop.permute.xlu0 %130 }
 0x3f8   :  { %v272_v29 = vadd.f32 %v3068_v41, %v131_v28  ;;  %v453_v37 = vpack.c.bf16 %v267_v35, %v267_v35 }
 0x3f9   :  { %v136_v30 = vpop.permute.xlu1 %135 }
 0x3fa   :  { %v593_v31 = vpack.c.bf16 %v272_v29, %v272_v29  ;;  %v275_v34 = vadd.f32 %v3070_v44, %v136_v30 }
 0x3fc   :  { %v733_v36 = vpack.c.bf16 %v275_v34, %v275_v34 }
 0x3fe   :  { %v2887_v15 = vpop.eup %2886 }
 0x3ff   :  { %v394_v16 = vsel %vm381_vm4, %v2887_v15, 0.0 }
 0x400   :  { %v2889_v17 = vpop.eup %2888  ;;  %395 = vadd.xlane.f32.xlu1 %v394_v16 }
 0x401   :  { %v397_v18 = vsel %vm381_vm4, %v2889_v17, 0.0 }
 0x402   :  { %398 = vadd.xlane.f32.xlu0 %v397_v18 }
 0x411   :  { %145 = vperm.xlu1 %2819, %v103_v19  }
 0x415   :  { %150 = vperm.xlu1 %2819, %v104_v20  }
 0x418   :  { %160 = vperm.xlu0 %2818, %v106_v23  }
 0x419   :  { %155 = vperm.xlu1 %2819, %v105_v25  }
 0x436   :  { %595 = vxpose.xlu0.c.b16.start.end [1/1] (short) (narrow) %v593_v31, 16 }
 0x43a   :  { %735 = vxpose.xlu0.c.b16.start.end [1/1] (short) (narrow) %v733_v36, 16 }
 0x43c   :  { %455 = vxpose.xlu1.c.b16.start.end [1/1] (short) (narrow) %v453_v37, 16 }
 0x48d   :  { %v396_v38 = vpop.xlane.xlu1 %395 }
 0x48f   :  { %v399_v40 = vpop.xlane.xlu0 %398 }
 0x490   :  { %2890 = vrcp.f32 %v399_v40 }
 0x491   :  { %v146_v42 = vpop.permute.xlu1 %145  ;;  %2892 = vrcp.f32 %v396_v38 }
 0x492   :  { %v283_v55 = vadd.f32 %v3078_v52, %v146_v42 }
 0x494   :  { %v454_v52 = vpack.c.bf16 %v283_v55, %v283_v55 }
 0x495   :  { %v151_v43 = vpop.permute.xlu1 %150 }
 0x496   :  { %v288_v46 = vadd.f32 %v3074_v48, %v151_v43  ;;  %v475_v1 = vsel %vm332_vm2, %v454_v52, 0 }
 0x497   :  { %v161_v41 = vpop.permute.xlu0 %160 }
 0x498   :  { %v594_v47 = vpack.c.bf16 %v288_v46, %v288_v46  ;;  %v296_v49 = vadd.f32 %v295_v22, %v161_v41 }
 0x499   :  { %v156_v51 = vpop.permute.xlu1 %155 }
 0x49a   :  { %v615_v44 = vsel %vm332_vm2, %v594_v47, 0  ;;  %v405_v45 = vpack.c.bf16 %v296_v49, %v296_v49  ;;  %v291_v53 = vadd.f32 %v3076_v50, %v156_v51  ;;  %v2891_v54 = vpop.eup %2890 }
 0x49b   :  { %2652 = vmatpush3.bf16.msra.mxu0 %v615_v44  ;;  %v2893_v48 = vpop.eup %2892  ;;  %v403_v60 = vmul.f32 %v2891_v54, %v2889_v17 }
 0x49c   :  { %v410_v56 = vsel %vm381_vm4, %v405_v45, 0  ;;  %v734_v57 = vpack.c.bf16 %v291_v53, %v291_v53  ;;  %v603_v58 = vpop.trf.xlu0  ;;  %2663 = vmatprep.subr.bf16.mxu0 %v2977_v39  ;;  %v402_v50 = vmul.f32 %v2893_v48, %v2887_v15 }
 0x49d   :  { %2634 = vmatpush3.bf16.xpose.msra.mxu1 %v410_v56 }
 0x49e   :  { %v755_v61 = vsel %vm332_vm2, %v734_v57, 0  ;;  %2654 = vmatmul.mubr.msk.bf16.vlgmr.msra.gmra.mrb[12].mxu0 %vm328_vm3, %v603_v58  ;;  %2639 = vmatprep.subr.bf16.mxu1 %v2977_v39  ;;  %v404_v62 = vpack.c.bf16 %v403_v60, %v402_v50 }
 0x49f   :  { %2664 = vmatpush3.bf16.msra.mxu0 %v755_v61  ;;  %2665 = vmatprep.mubr.msk.bf16.mxu0 %vm2978_vm1, %v2977_v39 }
 0x4a0   :  { %2675 = vmatprep.subr.bf16.mxu0 %v2977_v39  ;;  %v743_v0 = vpop.trf.xlu0 }
 0x4a2   :  { %v463_v2 = vpop.trf.xlu1 }
 0x4a4   :  { %2636 = vmatmul.mubr.msk.bf16.vlgmr.msra.gmra.mrb[4].mxu1 %vm381_vm4, %v404_v62 }
 0x4a5   :  { %2640 = vmatpush3.bf16.msra.mxu1 %v475_v1  ;;  %2641 = vmatprep.mubr.msk.bf16.mxu1 %vm2978_vm1, %v2977_v39 }
 0x4a6   :  { %2666 = vmatmul.mubr.msk.bf16.vlgmr.msra.gmra.mrb[16].mxu0 %vm328_vm3, %v743_v0  ;;  %2645 = vmatprep.subr.bf16.mxu1 %v2977_v39 }
 0x4a7   :  { %2679 = vmatprep.mubr.msk.bf16.mxu0 %vm2978_vm1, %v2977_v39 }
 0x4ac   :  { %2642 = vmatmul.mubr.msk.bf16.vlgmr.msra.gmra.mrb[8].mxu1 %vm328_vm3, %v463_v2 }
 0x4ad   :  { %2647 = vmatprep.mubr.msk.bf16.mxu1 %vm2978_vm1, %v2977_v39 }
 0x571   :  { %v651_v3 = vpop.f32.mrb[12].mxu0 }
 0x572   :  { %v2655_v4 = vpop.f32.mrb[13].mxu0  ;;  %v658_v15 = vmul.f32 0.35355338, %v651_v3 }
 0x573   :  { %v654_v5 = vpop.f32.mrb[14].mxu0 }
 0x574   :  { %v2656_v6 = vpop.f32.mrb[15].mxu0  ;;  %v659_v20 = vmul.f32 0.35355338, %v654_v5  ;;  %v660_v28 = vadd.f32 %v658_v15, %v3098_v59  ;;  %v107_v5 = vld [vmem:[%s3576_s4 + $0x48] sm:$0xff] }
 0x576   :  { %v662_v35 = vsel %vm381_vm4, %v660_v28, -inf  ;;  %v661_v36 = vadd.f32 %v659_v20, %v3103_v63 }
 0x577   :  { %v3164_v7 = vpop.f32.mrb[4].mxu1 }
 0x578   :  { %v2637_v8 = vpop.f32.mrb[5].mxu1  ;;  %v665_v40 = vsel %vm381_vm4, %v661_v36, -inf }
 0x579   :  { %v3166_v9 = vpop.f32.mrb[6].mxu1  ;;  %v791_v10 = vpop.f32.mrb[16].mxu0  ;;  %v108_v8 = vld [vmem:[%s3576_s4 + $0x50] sm:$0xff] }
 0x57a   :  { %v2638_v11 = vpop.f32.mrb[7].mxu1  ;;  %v2667_v12 = vpop.f32.mrb[17].mxu0  ;;  %v798_v27 = vmul.f32 0.35355338, %v791_v10 }
 0x57b   :  { %v794_v13 = vpop.f32.mrb[18].mxu0 }
 0x57c   :  { %v2668_v14 = vpop.f32.mrb[19].mxu0  ;;  %v799_v31 = vmul.f32 0.35355338, %v794_v13  ;;  %v800_v37 = vadd.f32 %v798_v27, %v3098_v59  ;;  %v109_v13 = vld [vmem:[%s3576_s4 + $0x58] sm:$0xff] }
 0x57e   :  { %v801_v38 = vadd.f32 %v799_v31, %v3103_v63  ;;  %v802_v42 = vsel %vm381_vm4, %v800_v37, -inf }
 0x57f   :  { %v511_v16 = vpop.f32.mrb[8].mxu1 }
 0x580   :  { %v518_v17 = vmul.f32 0.35355338, %v511_v16  ;;  %v2643_v18 = vpop.f32.mrb[9].mxu1  ;;  %v805_v43 = vsel %vm381_vm4, %v801_v38, -inf }
 0x581   :  { %v514_v19 = vpop.f32.mrb[10].mxu1 }
 0x582   :  { %v519_v22 = vmul.f32 0.35355338, %v514_v19  ;;  %v2644_v23 = vpop.f32.mrb[11].mxu1  ;;  %v520_v25 = vadd.f32 %v518_v17, %v3098_v59 }
 0x584   :  { %v522_v29 = vsel %vm381_vm4, %v520_v25, -inf  ;;  %v521_v30 = vadd.f32 %v519_v22, %v3103_v63 }
 0x585   :  { %523 = vmax.xlane.f32.xlu1 %v522_v29 }
 0x586   :  { %v525_v34 = vsel %vm381_vm4, %v521_v30, -inf }
 0x587   :  { %526 = vmax.xlane.f32.xlu0 %v525_v34 }
 0x589   :  { %663 = vmax.xlane.f32.xlu1 %v662_v35 }
 0x58b   :  { %666 = vmax.xlane.f32.xlu0 %v665_v40 }
 0x58d   :  { %803 = vmax.xlane.f32.xlu1 %v802_v42 }
 0x58f   :  { %806 = vmax.xlane.f32.xlu0 %v805_v43 }
 0x612   :  { %v524_v46 = vpop.xlane.xlu1 %523 }
 0x613   :  { %v528_v6 = vsub.f32 %v520_v25, %v524_v46 }
 0x614   :  { %v527_v41 = vpop.xlane.xlu0 %526 }
 0x615   :  { %v529_v57 = vsub.f32 %v521_v30, %v527_v41  ;;  %v530_v10 = vmul.f32 1.442695, %v528_v6 }
 0x616   :  { %v664_v47 = vpop.xlane.xlu1 %663 }
 0x617   :  { %v668_v49 = vsub.f32 %v660_v28, %v664_v47  ;;  %v532_v48 = vmul.f32 1.442695, %v529_v57 }
 0x618   :  { %v667_v51 = vpop.xlane.xlu0 %666 }
 0x619   :  { %v670_v44 = vmul.f32 1.442695, %v668_v49  ;;  %v669_v59 = vsub.f32 %v661_v36, %v667_v51 }
 0x61a   :  { %v804_v45 = vpop.xlane.xlu1 %803 }
 0x61b   :  { %2894 = vpow2.f32 %v670_v44  ;;  %v672_v63 = vmul.f32 1.442695, %v669_v59  ;;  %v808_v53 = vsub.f32 %v800_v37, %v804_v45 }
 0x61c   :  { %v807_v54 = vpop.xlane.xlu0 %806 }
 0x61d   :  { %2896 = vpow2.f32 %v672_v63  ;;  %v810_v55 = vmul.f32 1.442695, %v808_v53  ;;  %v809_v56 = vsub.f32 %v801_v38, %v807_v54  ;;  %v2856_v54 = vld [vmem:[%s3575_s2 + $0x60] sm:$0xff]  }
 0x61e   :  { %2676 = vmatpush3.bf16.msra.mxu0 %v2856_v54 }
 0x61f   :  { %2898 = vpow2.f32 %v810_v55  ;;  %v812_v58 = vmul.f32 1.442695, %v809_v56  ;;  %2677 = vmatprep.subr.bf16.mxu0 %v2977_v39 }
 0x621   :  { %2900 = vpow2.f32 %v812_v58 }
 0x622   :  { %2902 = vpow2.f32 %v532_v48  ;;  %v2857_v48 = vld [vmem:[%s3575_s2 + $0x68] sm:$0xff]  }
 0x623   :  { %2904 = vpow2.f32 %v530_v10  ;;  %2678 = vmatpush3.bf16.msra.mxu0 %v2857_v48 }
 0x624   :  { %2691 = vmatprep.subr.bf16.mxu0 %v2977_v39 }
 0x625   :  { %v3180_v60 = vpop.eup %2894 }
 0x626   :  { %v674_v61 = vsel %vm381_vm4, %v3180_v60, 0.0 }
 0x627   :  { %v2897_v50 = vpop.eup %2896  ;;  %675 = vadd.xlane.f32.xlu1 %v674_v61 }
 0x628   :  { %v677_v52 = vsel %vm381_vm4, %v2897_v50, 0.0 }
 0x629   :  { %v3185_v62 = vpop.eup %2898  ;;  %678 = vadd.xlane.f32.xlu0 %v677_v52 }
 0x62a   :  { %v814_v0 = vsel %vm381_vm4, %v3185_v62, 0.0 }
 0x62b   :  { %v3189_v1 = vpop.eup %2900 }
 0x62c   :  { %v817_v2 = vsel %vm381_vm4, %v3189_v1, 0.0  ;;  %v2903_v3 = vpop.eup %2902 }
 0x62d   :  { %815 = vadd.xlane.f32.xlu0 %v814_v0  ;;  %v537_v4 = vsel %vm381_vm4, %v2903_v3, 0.0  ;;  %v2905_v11 = vpop.eup %2904 }
 0x62e   :  { %v534_v12 = vsel %vm381_vm4, %v2905_v11, 0.0 }
 0x631   :  { %818 = vadd.xlane.f32.xlu0 %v817_v2 }
 0x635   :  { %538 = vadd.xlane.f32.xlu0 %v537_v4 }
 0x638   :  { %165 = vperm.xlu1 %2819, %v107_v5  }
 0x64b   :  { %170 = vperm.xlu0 %2818, %v108_v8  }
 0x65c   :  { %535 = vadd.xlane.f32.xlu1 %v534_v12 }
 0x66d   :  { %175 = vperm.xlu1 %2819, %v109_v13  }
 0x6b4   :  { %v676_v14 = vpop.xlane.xlu1 %675 }
 0x6b6   :  { %v679_v19 = vpop.xlane.xlu0 %678 }
 0x6b8   :  { %v166_v15 = vpop.permute.xlu1 %165 }
 0x6b9   :  { %v299_v16 = vadd.f32 %v3136_v26, %v166_v15 }
 0x6ba   :  { %v816_v20 = vpop.xlane.xlu0 %815 }
 0x6bb   :  { %v545_v17 = vpack.c.bf16 %v299_v16, %v299_v16 }
 0x6bd   :  { %v550_v18 = vsel %vm381_vm4, %v545_v17, 0 }
 0x6be   :  { %2646 = vmatpush3.bf16.xpose.msra.mxu1 %v550_v18  ;;  %v819_v22 = vpop.xlane.xlu0 %818 }
 0x6bf   :  { %2657 = vmatprep.subr.bf16.mxu1 %v2977_v39 }
 0x6c2   :  { %v539_v23 = vpop.xlane.xlu0 %538 }
 0x6c3   :  { %2906 = vrcp.f32 %v539_v23 }
 0x6ca   :  { %v171_v27 = vpop.permute.xlu0 %170 }
 0x6cb   :  { %v304_v28 = vadd.f32 %v3126_v21, %v171_v27 }
 0x6cd   :  { %v2907_v29 = vpop.eup %2906  ;;  %v685_v31 = vpack.c.bf16 %v304_v28, %v304_v28 }
 0x6ce   :  { %v543_v30 = vmul.f32 %v2907_v29, %v2903_v3 }
 0x6cf   :  { %v690_v38 = vsel %vm381_vm4, %v685_v31, 0 }
 0x6e9   :  { %v536_v25 = vpop.xlane.xlu1 %535 }
 0x6ea   :  { %2908 = vrcp.f32 %v536_v25 }
 0x6eb   :  { %2910 = vrcp.f32 %v679_v19 }
 0x6ec   :  { %2912 = vrcp.f32 %v676_v14 }
 0x6ed   :  { %2914 = vrcp.f32 %v819_v22  ;;  %v176_v35 = vpop.permute.xlu1 %175 }
 0x6ee   :  { %2916 = vrcp.f32 %v816_v20  ;;  %v307_v40 = vadd.f32 %v3131_v24, %v176_v35 }
 0x6f0   :  { %v825_v46 = vpack.c.bf16 %v307_v40, %v307_v40 }
 0x6f2   :  { %v830_v49 = vsel %vm381_vm4, %v825_v46, 0  ;;  %v2859_v46 = vld [vmem:[%s3579_s3 + $0x8] sm:$0xff]  }
 0x6f4   :  { %v2909_v26 = vpop.eup %2908 }
 0x6f5   :  { %v542_v34 = vmul.f32 %v2909_v26, %v2905_v11  ;;  %v2911_v37 = vpop.eup %2910 }
 0x6f6   :  { %v2913_v42 = vpop.eup %2912  ;;  %v683_v21 = vmul.f32 %v2911_v37, %v2897_v50 }
 0x6f7   :  { %v544_v36 = vpack.c.bf16 %v543_v30, %v542_v34  ;;  %v682_v43 = vmul.f32 %v2913_v42, %v3180_v60  ;;  %v2915_v47 = vpop.eup %2914 }
 0x6f8   :  { %v2917_v24 = vpop.eup %2916  ;;  %v823_v51 = vmul.f32 %v2915_v47, %v3189_v1 }
 0x6f9   :  { %2648 = vmatmul.mubr.msk.bf16.vlgmr.msra.gmra.mrb[12].mxu1 %vm381_vm4, %v544_v36  ;;  %v684_v41 = vpack.c.bf16 %v683_v21, %v682_v43  ;;  %v822_v44 = vmul.f32 %v2917_v24, %v3185_v62 }
 0x6fa   :  { %2658 = vmatpush3.bf16.xpose.msra.mxu1 %v690_v38  ;;  %2659 = vmatprep.mubr.msk.bf16.mxu1 %vm2978_vm1, %v2977_v39 }
 0x6fb   :  { %2669 = vmatprep.subr.bf16.mxu1 %v2977_v39  ;;  %v824_v59 = vpack.c.bf16 %v823_v51, %v822_v44 }
 0x701   :  { %2660 = vmatmul.mubr.msk.bf16.vlgmr.msra.gmra.mrb[16].mxu1 %vm381_vm4, %v684_v41 }
 0x702   :  { %2670 = vmatpush3.bf16.xpose.msra.mxu1 %v830_v49  ;;  %2671 = vmatprep.mubr.msk.bf16.mxu1 %vm2978_vm1, %v2977_v39 }
 0x703   :  { %2683 = vmatprep.subr.bf16.mxu1 %v2977_v39 }
 0x709   :  { %2672 = vmatmul.mubr.msk.bf16.vlgmr.msra.gmra.mrb[20].mxu1 %vm381_vm4, %v824_v59 }
 0x70a   :  { %2687 = vmatprep.mubr.msk.bf16.mxu1 %vm2978_vm1, %v2977_v39 }
 0x7cc   :  { %v586_v45 = vpop.f32.mrb[12].mxu1 }
 0x7cd   :  { %v2649_v63 = vpop.f32.mrb[13].mxu1 }
 0x7ce   :  { %v589_v53 = vpop.f32.mrb[14].mxu1  ;;  %v2479_v63 = vld [vmem:[%s3577_s5 + $0x3] ss:$0 sm:$0xff] }
 0x7cf   :  { %v2820_v55 = vpack.i.bf16 %v589_v53, %v586_v45  ;;  %v2650_v56 = vpop.f32.mrb[15].mxu1 }
 0x7d0   :  { %v2480_v56 = vld [vmem:[%s3577_s5 + $0x4] ss:$0 sm:$0xff] }
 0x7d1   :  { %2821 = vrot.lane.b32.xlu1 %v2820_v55, %s2979_s21 }
 0x7d4   :  { %v726_v57 = vpop.f32.mrb[16].mxu1 }
 0x7d5   :  { %v2661_v58 = vpop.f32.mrb[17].mxu1 }
 0x7d6   :  { %v729_v60 = vpop.f32.mrb[18].mxu1 }
 0x7d7   :  { %v2825_v61 = vpack.i.bf16 %v729_v60, %v726_v57  ;;  %v2662_v50 = vpop.f32.mrb[19].mxu1 }
 0x7d8   :  { %v2861_v50 = vld [vmem:[%s3575_s2 + $0x88] sm:$0xff]  }
 0x7d9   :  { %2826 = vrot.lane.b32.xlu1 %v2825_v61, %s2980_s24  ;;  %v2860_v61 = vld [vmem:[%s3575_s2 + $0x80] sm:$0xff]  }
 0x7dc   :  { %v866_v52 = vpop.f32.mrb[20].mxu1 }
 0x7dd   :  { %v2673_v62 = vpop.f32.mrb[21].mxu1 }
 0x7de   :  { %v869_v0 = vpop.f32.mrb[22].mxu1  ;;  %v2863_v62 = vld [vmem:[%s3575_s2 + $0x98] sm:$0xff]  }
 0x7df   :  { %v2830_v1 = vpack.i.bf16 %v869_v0, %v866_v52  ;;  %v2674_v2 = vpop.f32.mrb[23].mxu1  ;;  %v2862_v52 = vld [vmem:[%s3575_s2 + $0x90] sm:$0xff]   ;;  %v2481_v0 = vld [vmem:[%s3577_s5 + $0x5] ss:$0 sm:$0xff] }
 0x7e1   :  { %2831 = vrot.lane.b32.xlu1 %v2830_v1, %s2981_s0 }
 0x843   :  { %v2822_v3 = vpop.permute.xlu1 %2821 }
 0x844   :  { %v2824_v5 = vunpack.i.h.bf16 %v2822_v3  ;;  %v2823_v6 = vunpack.i.l.bf16 %v2822_v3 }
 0x846   :  { %v898_v12 = vsel %vm328_vm3, %v3166_v9, %v2824_v5  ;;  %v897_v13 = vsel %vm328_vm3, %v3164_v7, %v2823_v6  ;;  %v2475_v7 = vld [vmem:[%s3577_s5 + $0x2] ss:$0 sm:$0xff] }
 0x84b   :  { %v2827_v4 = vpop.permute.xlu1 %2826 }
 0x84c   :  { %v2829_v8 = vunpack.i.h.bf16 %v2827_v4  ;;  %v2828_v10 = vunpack.i.l.bf16 %v2827_v4 }
 0x84e   :  { %v900_v16 = vsel %vm381_vm4, %v898_v12, %v2829_v8  ;;  %v899_v17 = vsel %vm381_vm4, %v897_v13, %v2828_v10 }
 0x853   :  { %v2832_v11 = vpop.permute.xlu1 %2831 }
 0x854   :  { %v2834_v14 = vunpack.i.h.bf16 %v2832_v11  ;;  %v2833_v15 = vunpack.i.l.bf16 %v2832_v11 }
 0x856   :  { %v903_v18 = vsel %vm901_vm5, %v900_v16, %v2834_v14  ;;  %v902_v19 = vsel %vm901_vm5, %v899_v17, %v2833_v15 }
 0x857   :  { %v904_v20 = vpack.c.bf16 %v903_v18, %v902_v19 }
 0x859   :  { %2680 = vmatmul.mubr.msk.bf16.vlgmr.msra.gmra.mrb[20].mxu0 %vm28_vm0, %v904_v20  ;;  %v2485_v20 = vld [vmem:[%s3577_s5 + $0x6] ss:$0 sm:$0xff] }
 0x85a   :  { %2699 = vmatprep.mubr.msk.bf16.mxu0 %vm2978_vm1, %v2977_v39  ;;  %2692 = vmatpush3.bf16.msra.mxu0 %v2860_v61 }
 0x85b   :  { %2693 = vmatprep.subr.bf16.mxu0 %v2977_v39 }
 0x85e   :  { %2694 = vmatpush3.bf16.msra.mxu0 %v2861_v50  ;;  %v2492_v50 = vld [vmem:[%s3577_s5 + $0x8] ss:$0 sm:$0xff] }
 0x85f   :  { %2695 = vmatprep.subr.bf16.mxu0 %v2977_v39 }
 0x862   :  { %2696 = vmatpush3.bf16.msra.mxu0 %v2862_v52 }
 0x863   :  { %2697 = vmatprep.subr.bf16.mxu0 %v2977_v39 }
 0x866   :  { %2698 = vmatpush3.bf16.msra.mxu0 %v2863_v62 }
 0x867   :  { %2717 = vmatprep.subr.bf16.mxu0 %v2977_v39 }
 0x92c   :  { %v958_v9 = vpop.f32.mrb[20].mxu0 }
 0x92d   :  { %v959_v22 = vadd.f32 %v2475_v7, %v958_v9  ;;  %v2681_v23 = vpop.f32.mrb[21].mxu0 }
 0x92e   :  { %v961_v25 = vpop.f32.mrb[22].mxu0 }
 0x92f   :  { %v962_v27 = vadd.f32 %v2475_v7, %v961_v25  ;;  %v2682_v28 = vpop.f32.mrb[23].mxu0  ;;  %v965_v29 = vadd.f32 %v959_v22, %v3044_v32 }
 0x931   :  { %v967_v26 = vsel %vm28_vm0, %v965_v29, 0.0  ;;  %v966_v30 = vadd.f32 %v962_v27, %v3046_v33  ;;  %v2858_v33 = vld [vmem:[%s3579_s3] sm:$0xff]  }
 0x932   :  { %968 = vadd.xlane.f32.xlu0 %v967_v26  ;;  %2684 = vmatpush3.bf16.msra.mxu1 %v2858_v33  ;;  %v1220_v33 = vld [vmem:[%s3576_s4 + $0x70] sm:$0xff] }
 0x933   :  { %v970_v31 = vsel %vm28_vm0, %v966_v30, 0.0  ;;  %2685 = vmatprep.subr.bf16.mxu1 %v2977_v39 }
 0x934   :  { %971 = vadd.xlane.f32.xlu1 %v970_v31 }
 0x936   :  { %2686 = vmatpush3.bf16.msra.mxu1 %v2859_v46  ;;  %v1219_v46 = vld [vmem:[%s3576_s4 + $0x68] sm:$0xff] }
 0x9bf   :  { %v969_v34 = vpop.xlane.xlu0 %968 }
 0x9c0   :  { %v973_v35 = vmul.f32 0.03125, %v969_v34 }
 0x9c1   :  { %v972_v36 = vpop.xlane.xlu1 %971 }
 0x9c2   :  { %v975_v37 = vsub.f32 %v965_v29, %v973_v35  ;;  %v974_v38 = vmul.f32 0.03125, %v972_v36 }
 0x9c4   :  { %v976_v40 = vsub.f32 %v966_v30, %v974_v38  ;;  %v977_v42 = vmul.f32 %v975_v37, %v975_v37 }
 0x9c6   :  { %v979_v21 = vsel %vm28_vm0, %v977_v42, 0.0  ;;  %v978_v43 = vmul.f32 %v976_v40, %v976_v40 }
 0x9c7   :  { %980 = vadd.xlane.f32.xlu0 %v979_v21 }
 0x9c8   :  { %v982_v32 = vsel %vm28_vm0, %v978_v43, 0.0 }
 0x9cb   :  { %983 = vadd.xlane.f32.xlu0 %v982_v32  ;;  %v1218_v32 = vld [vmem:[%s3576_s4 + $0x60] sm:$0xff] }
 0xa54   :  { %v981_v41 = vpop.xlane.xlu0 %980 }
 0xa55   :  { %v985_v47 = vmul.f32 0.03125, %v981_v41  ;;  %v1221_v41 = vld [vmem:[%s3576_s4 + $0x78] sm:$0xff] }
 0xa57   :  { %v987_v49 = vadd.f32 1e-05, %v985_v47  ;;  %v1222_v47 = vld [vmem:[%s3576_s4 + $0x80] sm:$0xff] }
 0xa58   :  { %v984_v24 = vpop.xlane.xlu0 %983 }
 0xa59   :  { %2918 = vrsqrt.f32 %v987_v49  ;;  %v986_v51 = vmul.f32 0.03125, %v984_v24  ;;  %v1223_v49 = vld [vmem:[%s3576_s4 + $0x88] sm:$0xff]  ;;  %v1224_v24 = vld [vmem:[%s3576_s4 + $0x90] sm:$0xff] }
 0xa5b   :  { %v988_v44 = vadd.f32 1e-05, %v986_v51  ;;  %v1225_v51 = vld [vmem:[%s3576_s4 + $0x98] sm:$0xff] }
 0xa5d   :  { %2920 = vrsqrt.f32 %v988_v44  ;;  %v2864_v44 = vld [vmem:[%s3575_s2 + $0x30] sm:$0xff]  }
 0xa63   :  { %v2919_v59 = vpop.eup %2918 }
 0xa64   :  { %v991_v45 = vmul.f32 %v2919_v59, %v975_v37 }
 0xa66   :  { %v997_v54 = vmul.f32 %v2479_v63, %v991_v45 }
 0xa67   :  { %v2921_v53 = vpop.eup %2920 }
 0xa68   :  { %v992_v55 = vmul.f32 %v2921_v53, %v976_v40  ;;  %v1003_v58 = vadd.f32 %v2480_v56, %v997_v54 }
 0xa6a   :  { %v998_v57 = vmul.f32 %v2479_v63, %v992_v55 }
 0xa6c   :  { %v1004_v48 = vadd.f32 %v2480_v56, %v998_v57  ;;  %v2491_v57 = vld [vmem:[%s3577_s5 + $0x7] ss:$0 sm:$0xff] }
 0xa6e   :  { %v1005_v60 = vpack.c.bf16 %v1004_v48, %v1003_v58 }
 0xa70   :  { %2688 = vmatmul.mubr.msk.bf16.vlgmr.msra.gmra.mrb[24].mxu1 %vm28_vm0, %v1005_v60 }
 0xa71   :  { %2705 = vmatprep.mubr.msk.bf16.mxu1 %vm28_vm0, %v2864_v44 }
 0xb43   :  { %v1059_v1 = vpop.f32.mrb[24].mxu1 }
 0xb44   :  { %v1060_v2 = vadd.f32 %v2481_v0, %v1059_v1  ;;  %v2689_v3 = vpop.f32.mrb[25].mxu1 }
 0xb45   :  { %v1062_v4 = vpop.f32.mrb[26].mxu1  ;;  %v2865_v3 = vld [vmem:[%s3575_s2 + $0x38] sm:$0xff]  }
 0xb46   :  { %v1068_v5 = vmul.f32 0.70710677, %v1060_v2  ;;  %v1063_v6 = vadd.f32 %v2481_v0, %v1062_v4  ;;  %v2690_v8 = vpop.f32.mrb[27].mxu1  ;;  %v1066_v14 = vmul.f32 0.5, %v1060_v2  ;;  %v2866_v4 = vld [vmem:[%s3575_s2 + $0x40] sm:$0xff]  }
 0xb47   :  { %v2869_v8 = vld [vmem:[%s3575_s2 + $0x58] sm:$0xff]  }
 0xb48   :  { %2922 = verf.f32 %v1068_v5  ;;  %v1069_v10 = vmul.f32 0.70710677, %v1063_v6  ;;  %v1067_v15 = vmul.f32 0.5, %v1063_v6  ;;  %v2867_v5 = vld [vmem:[%s3575_s2 + $0x48] sm:$0xff]   ;;  %v2868_v6 = vld [vmem:[%s3575_s2 + $0x50] sm:$0xff]  }
 0xb4a   :  { %2924 = verf.f32 %v1069_v10 }
 0xb52   :  { %v2923_v11 = vpop.eup %2922 }
 0xb53   :  { %v1072_v12 = vadd.f32 1.0, %v2923_v11 }
 0xb54   :  { %v2925_v13 = vpop.eup %2924 }
 0xb55   :  { %v1073_v16 = vadd.f32 1.0, %v2925_v13  ;;  %v1074_v17 = vmul.f32 %v1072_v12, %v1066_v14 }
 0xb57   :  { %v1075_v18 = vmul.f32 %v1073_v16, %v1067_v15 }
 0xb59   :  { %v1076_v19 = vpack.c.bf16 %v1075_v18, %v1074_v17 }
 0xb5b   :  { %2700 = vmatmul.mubr.msk.bf16.vlgmr.msra.gmra.mrb[24].mxu0 %vm1105_vm6, %v1076_v19 }
 0xb5c   :  { %2719 = vmatprep.mubr.msk.bf16.mxu0 %vm2978_vm1, %v2977_v39 }
 0xc2e   :  { %v1143_v7 = vpop.f32.mrb[24].mxu0 }
 0xc2f   :  { %v1144_v9 = vadd.f32 %v2485_v20, %v1143_v7  ;;  %v2701_v22 = vpop.f32.mrb[25].mxu0 }
 0xc30   :  { %v1146_v23 = vpop.f32.mrb[26].mxu0 }
 0xc31   :  { %v1147_v25 = vadd.f32 %v2485_v20, %v1146_v23  ;;  %v2702_v27 = vpop.f32.mrb[27].mxu0  ;;  %v1150_v28 = vadd.f32 %v1144_v9, %v1003_v58 }
 0xc33   :  { %v1152_v29 = vsel %vm28_vm0, %v1150_v28, 0.0  ;;  %v1151_v26 = vadd.f32 %v1147_v25, %v1004_v48 }
 0xc34   :  { %1153 = vadd.xlane.f32.xlu1 %v1152_v29 }
 0xc35   :  { %v1155_v30 = vsel %vm28_vm0, %v1151_v26, 0.0 }
 0xc36   :  { %1156 = vadd.xlane.f32.xlu0 %v1155_v30 }
 0xcc1   :  { %v1154_v31 = vpop.xlane.xlu1 %1153 }
 0xcc2   :  { %v1158_v34 = vmul.f32 0.03125, %v1154_v31 }
 0xcc3   :  { %v1157_v35 = vpop.xlane.xlu0 %1156 }
 0xcc4   :  { %v1160_v36 = vsub.f32 %v1150_v28, %v1158_v34  ;;  %v1159_v37 = vmul.f32 0.03125, %v1157_v35 }
 0xcc6   :  { %v1161_v38 = vsub.f32 %v1151_v26, %v1159_v37  ;;  %v1162_v40 = vmul.f32 %v1160_v36, %v1160_v36 }
 0xcc8   :  { %v1164_v42 = vsel %vm28_vm0, %v1162_v40, 0.0  ;;  %v1163_v21 = vmul.f32 %v1161_v38, %v1161_v38 }
 0xcc9   :  { %1165 = vadd.xlane.f32.xlu1 %v1164_v42 }
 0xcca   :  { %v1167_v43 = vsel %vm28_vm0, %v1163_v21, 0.0 }
 0xccb   :  { %1168 = vadd.xlane.f32.xlu0 %v1167_v43 }
 0xcda   :  { %1240 = vperm.xlu1 %2819, %v1218_v32  }
 0xcde   :  { %1250 = vperm.xlu1 %2819, %v1220_v33  }
 0xce1   :  { %1245 = vperm.xlu0 %2818, %v1219_v46  }
 0xce2   :  { %1255 = vperm.xlu1 %2819, %v1221_v41  }
 0xce5   :  { %1260 = vperm.xlu0 %2818, %v1222_v47  }
 0xce6   :  { %1265 = vperm.xlu1 %2819, %v1223_v49  }
 0xce9   :  { %1270 = vperm.xlu0 %2818, %v1224_v24  }
 0xcea   :  { %1275 = vperm.xlu1 %2819, %v1225_v51  }
 0xd56   :  { %v1166_v59 = vpop.xlane.xlu1 %1165 }
 0xd57   :  { %v1170_v45 = vmul.f32 0.03125, %v1166_v59 }
 0xd58   :  { %v1169_v63 = vpop.xlane.xlu0 %1168 }
 0xd59   :  { %v1172_v53 = vadd.f32 1e-05, %v1170_v45  ;;  %v1171_v54 = vmul.f32 0.03125, %v1169_v63 }
 0xd5a   :  { %v1241_v10 = vpop.permute.xlu1 %1240 }
 0xd5b   :  { %2926 = vrsqrt.f32 %v1172_v53  ;;  %v1173_v55 = vadd.f32 1e-05, %v1171_v54 }
 0xd5d   :  { %2928 = vrsqrt.f32 %v1173_v55 }
 0xd5e   :  { %v1251_v11 = vpop.permute.xlu1 %1250 }
 0xd60   :  { %v1246_v16 = vpop.permute.xlu0 %1245 }
 0xd62   :  { %v1256_v7 = vpop.permute.xlu1 %1255 }
 0xd64   :  { %v1261_v27 = vpop.permute.xlu0 %1260 }
 0xd65   :  { %v2927_v56 = vpop.eup %2926 }
 0xd66   :  { %v1176_v58 = vmul.f32 %v2927_v56, %v1160_v36  ;;  %v1266_v30 = vpop.permute.xlu1 %1265 }
 0xd67   :  { %v2929_v48 = vpop.eup %2928 }
 0xd68   :  { %v1177_v60 = vmul.f32 %v2929_v48, %v1161_v38  ;;  %v1182_v61 = vmul.f32 %v2491_v57, %v1176_v58  ;;  %v1271_v42 = vpop.permute.xlu0 %1270 }
 0xd6a   :  { %v1183_v52 = vmul.f32 %v2491_v57, %v1177_v60  ;;  %v3333_v62 = vadd.f32 %v2492_v50, %v1182_v61  ;;  %v1276_v46 = vpop.permute.xlu1 %1275 }
 0xd6c   :  { %v3335_v0 = vadd.f32 %v2492_v50, %v1183_v52  ;;  %v2974_v52 = vld [vmem:[%s3578_s1] sm:$0xff] }
 0xd6e   :  { %v1237_v1 = vpack.c.bf16 %v3335_v0, %v3333_v62 }
 0xd70   :  { %2810 = vmatprep.subr.msk.bf16.mxu1 %vm28_vm0, %v1237_v1  ;;  %v1347_v2 = vsel %vm28_vm0, %v1237_v1, 0 }
 0xd71   :  { %2704 = vmatpush3.bf16.xpose.msra.mxu1 %v1347_v2 }
 0xd72   :  { %2729 = vmatprep.subr.bf16.mxu1 %v2977_v39 }
 0xd78   :  { %2706 = vmatmul.mubr.msk.bf16.vlgmr.msra.gmra.mrb[28].mxu1 %vm28_vm0, %v2865_v3 }
 0xd79   :  { %2709 = vmatprep.mubr.msk.bf16.mxu1 %vm28_vm0, %v2866_v4 }
 0xd80   :  { %2710 = vmatmul.mubr.msk.bf16.gmra.mrb[32].mxu1 %vm28_vm0, %v2867_v5 }
 0xd81   :  { %2713 = vmatprep.mubr.msk.bf16.mxu1 %vm28_vm0, %v2868_v6  ;;  %v2975_v6 = vld [vmem:[%s3578_s1 + $0x8] sm:$0xff] }
 0xd88   :  { %2714 = vmatmul.mubr.msk.bf16.gmra.mrb[36].mxu1 %vm28_vm0, %v2869_v8 }
 0xd89   :  { %2731 = vmatprep.mubr.msk.bf16.mxu1 %vm2978_vm1, %v2977_v39 }
 0xe4b   :  { %v2707_v12 = vpop.f32.mrb[28].mxu1 }
 0xe4c   :  { %v1383_v13 = vpop.f32.mrb[29].mxu1  ;;  %v1392_v18 = vadd.f32 %v2707_v12, %v1251_v11 }
 0xe4d   :  { %v1384_v14 = vadd.f32 %v1383_v13, %v1241_v10  ;;  %v2708_v15 = vpop.f32.mrb[30].mxu1 }
 0xe4e   :  { %v1386_v17 = vpop.f32.mrb[31].mxu1  ;;  %v1710_v22 = vpack.c.bf16 %v1392_v18, %v1392_v18  ;;  %v1395_v23 = vadd.f32 %v2708_v15, %v1256_v7 }
 0xe4f   :  { %v1430_v19 = vpack.c.bf16 %v1384_v14, %v1384_v14  ;;  %v1387_v20 = vadd.f32 %v1386_v17, %v1246_v16 }
 0xe50   :  { %v1850_v34 = vpack.c.bf16 %v1395_v23, %v1395_v23 }
 0xe51   :  { %v1570_v9 = vpack.c.bf16 %v1387_v20, %v1387_v20  ;;  %1432 = vxpose.xlu0.c.b16.start.end [1/1] (short) (narrow) %v1430_v19, 16 }
 0xe53   :  { %v2711_v25 = vpop.f32.mrb[32].mxu1  ;;  %1572 = vxpose.xlu1.c.b16.start.end [1/1] (short) (narrow) %v1570_v9, 16 }
 0xe54   :  { %v1399_v28 = vpop.f32.mrb[33].mxu1  ;;  %v1408_v21 = vadd.f32 %v2711_v25, %v1271_v42 }
 0xe55   :  { %v1400_v29 = vadd.f32 %v1399_v28, %v1261_v27  ;;  %v2712_v26 = vpop.f32.mrb[34].mxu1  ;;  %1712 = vxpose.xlu0.c.b16.start.end [1/1] (short) (narrow) %v1710_v22, 16 }
 0xe56   :  { %v1402_v31 = vpop.f32.mrb[35].mxu1  ;;  %v1711_v47 = vpack.c.bf16 %v1408_v21, %v1408_v21  ;;  %v1411_v44 = vadd.f32 %v2712_v26, %v1276_v46 }
 0xe57   :  { %v1431_v35 = vpack.c.bf16 %v1400_v29, %v1400_v29  ;;  %v1403_v36 = vadd.f32 %v1402_v31, %v1266_v30 }
 0xe58   :  { %v1732_v51 = vsel %vm332_vm2, %v1711_v47, 0  ;;  %v1851_v59 = vpack.c.bf16 %v1411_v44, %v1411_v44 }
 0xe59   :  { %v1452_v37 = vsel %vm332_vm2, %v1431_v35, 0  ;;  %v1571_v38 = vpack.c.bf16 %v1403_v36, %v1403_v36  ;;  %1852 = vxpose.xlu0.c.b16.start.end [1/1] (short) (narrow) %v1850_v34, 16 }
 0xe5a   :  { %2718 = vmatpush3.bf16.msra.mxu0 %v1452_v37  ;;  %v1872_v63 = vsel %vm332_vm2, %v1851_v59, 0  ;;  %v1226_v37 = vld [vmem:[%s3576_s4 + $0xa0] sm:$0xff] }
 0xe5b   :  { %v1592_v40 = vsel %vm332_vm2, %v1571_v38, 0  ;;  %2723 = vmatprep.subr.bf16.mxu0 %v2977_v39  ;;  %v3368_v43 = vpop.f32.mrb[36].mxu1  ;;  %v1227_v38 = vld [vmem:[%s3576_s4 + $0xa8] sm:$0xff] }
 0xe5c   :  { %2730 = vmatpush3.bf16.msra.mxu1 %v1592_v40  ;;  %v3370_v32 = vpop.f32.mrb[37].mxu1 }
 0xe5d   :  { %2741 = vmatprep.subr.bf16.mxu1 %v2977_v39  ;;  %v3372_v33 = vpop.f32.mrb[38].mxu1 }
 0xe5e   :  { %v3374_v41 = vpop.f32.mrb[39].mxu1 }
 0xeb7   :  { %v1440_v49 = vpop.trf.xlu0 }
 0xeb8   :  { %2720 = vmatmul.mubr.msk.bf16.vlgmr.msra.gmra.mrb[28].mxu0 %vm328_vm3, %v1440_v49 }
 0xeb9   :  { %v1580_v24 = vpop.trf.xlu1  ;;  %2725 = vmatprep.mubr.msk.bf16.mxu0 %vm2978_vm1, %v2977_v39 }
 0xeba   :  { %2732 = vmatmul.mubr.msk.bf16.vlgmr.msra.gmra.mrb[40].mxu1 %vm328_vm3, %v1580_v24 }
 0xebb   :  { %2742 = vmatpush3.bf16.msra.mxu1 %v1732_v51  ;;  %2743 = vmatprep.mubr.msk.bf16.mxu1 %vm2978_vm1, %v2977_v39  ;;  %v1720_v45 = vpop.trf.xlu0 }
 0xebc   :  { %2753 = vmatprep.subr.bf16.mxu1 %v2977_v39 }
 0xebf   :  { %v1860_v53 = vpop.trf.xlu0 }
 0xec2   :  { %2744 = vmatmul.mubr.msk.bf16.vlgmr.msra.gmra.mrb[44].mxu1 %vm328_vm3, %v1720_v45 }
 0xec3   :  { %2754 = vmatpush3.bf16.msra.mxu1 %v1872_v63  ;;  %2755 = vmatprep.mubr.msk.bf16.mxu1 %vm2978_vm1, %v2977_v39 }
 0xec4   :  { %2765 = vmatprep.subr.bf16.mxu1 %v2977_v39 }
 0xeca   :  { %2756 = vmatmul.mubr.msk.bf16.vlgmr.msra.gmra.mrb[48].mxu1 %vm328_vm3, %v1860_v53 }
 0xecb   :  { %2769 = vmatprep.mubr.msk.bf16.mxu1 %vm2978_vm1, %v2977_v39 }
 0xf8b   :  { %v1488_v54 = vpop.f32.mrb[28].mxu0 }
 0xf8c   :  { %v1495_v55 = vmul.f32 0.35355338, %v1488_v54  ;;  %v2721_v56 = vpop.f32.mrb[29].mxu0 }
 0xf8d   :  { %v1491_v57 = vpop.f32.mrb[30].mxu0  ;;  %v1628_v58 = vpop.f32.mrb[40].mxu1 }
 0xf8e   :  { %v1496_v48 = vmul.f32 0.35355338, %v1491_v57  ;;  %v1635_v60 = vmul.f32 0.35355338, %v1628_v58  ;;  %v2733_v61 = vpop.f32.mrb[41].mxu1  ;;  %v2722_v50 = vpop.f32.mrb[31].mxu0  ;;  %v1497_v1 = vadd.f32 %v2974_v52, %v1495_v55 }
 0xf8f   :  { %v1631_v2 = vpop.f32.mrb[42].mxu1 }
 0xf90   :  { %v1636_v3 = vmul.f32 0.35355338, %v1631_v2  ;;  %v2734_v4 = vpop.f32.mrb[43].mxu1  ;;  %v1499_v5 = vsel %vm381_vm4, %v1497_v1, -inf  ;;  %v1498_v8 = vadd.f32 %v2975_v6, %v1496_v48  ;;  %v1637_v10 = vadd.f32 %v2974_v52, %v1635_v60 }
 0xf91   :  { %1500 = vmax.xlane.f32.xlu1 %v1499_v5 }
 0xf92   :  { %v1502_v11 = vsel %vm381_vm4, %v1498_v8, -inf  ;;  %v1638_v12 = vadd.f32 %v2975_v6, %v1636_v3  ;;  %v1639_v13 = vsel %vm381_vm4, %v1637_v10, -inf }
 0xf93   :  { %1503 = vmax.xlane.f32.xlu0 %v1502_v11 }
 0xf94   :  { %v1642_v17 = vsel %vm381_vm4, %v1638_v12, -inf }
 0xf95   :  { %1640 = vmax.xlane.f32.xlu1 %v1639_v13  ;;  %v1768_v14 = vpop.f32.mrb[44].mxu1 }
 0xf96   :  { %v1775_v15 = vmul.f32 0.35355338, %v1768_v14  ;;  %v2745_v16 = vpop.f32.mrb[45].mxu1 }
 0xf97   :  { %1643 = vmax.xlane.f32.xlu0 %v1642_v17  ;;  %v1771_v18 = vpop.f32.mrb[46].mxu1 }
 0xf98   :  { %v1776_v19 = vmul.f32 0.35355338, %v1771_v18  ;;  %v2746_v20 = vpop.f32.mrb[47].mxu1  ;;  %v1777_v7 = vadd.f32 %v2974_v52, %v1775_v15 }
 0xf9a   :  { %v1779_v9 = vsel %vm381_vm4, %v1777_v7, -inf  ;;  %v1778_v22 = vadd.f32 %v2975_v6, %v1776_v19 }
 0xf9b   :  { %1780 = vmax.xlane.f32.xlu1 %v1779_v9 }
 0xf9c   :  { %v1782_v23 = vsel %vm381_vm4, %v1778_v22, -inf }
 0xf9d   :  { %1783 = vmax.xlane.f32.xlu0 %v1782_v23  ;;  %v1908_v25 = vpop.f32.mrb[48].mxu1  ;;  %v1229_v23 = vld [vmem:[%s3576_s4 + $0xb8] sm:$0xff] }
 0xf9e   :  { %v1915_v27 = vmul.f32 0.35355338, %v1908_v25  ;;  %v2757_v28 = vpop.f32.mrb[49].mxu1 }
 0xf9f   :  { %v1911_v29 = vpop.f32.mrb[50].mxu1 }
 0xfa0   :  { %v1916_v26 = vmul.f32 0.35355338, %v1911_v29  ;;  %v2758_v30 = vpop.f32.mrb[51].mxu1  ;;  %v1917_v31 = vadd.f32 %v2974_v52, %v1915_v27 }
 0xfa2   :  { %v1919_v34 = vsel %vm381_vm4, %v1917_v31, -inf  ;;  %v1918_v35 = vadd.f32 %v2975_v6, %v1916_v26 }
 0xfa3   :  { %1920 = vmax.xlane.f32.xlu1 %v1919_v34 }
 0xfa4   :  { %v1922_v36 = vsel %vm381_vm4, %v1918_v35, -inf }
 0xfa5   :  { %1923 = vmax.xlane.f32.xlu0 %v1922_v36 }
 0xfb4   :  { %1280 = vperm.xlu1 %2819, %v1226_v37  }
 0xfbb   :  { %1285 = vperm.xlu0 %2818, %v1227_v38  }
0x101e   :  { %v1501_v40 = vpop.xlane.xlu1 %1500 }
0x101f   :  { %v1505_v42 = vsub.f32 %v1497_v1, %v1501_v40 }
0x1020   :  { %v1504_v21 = vpop.xlane.xlu0 %1503 }
0x1021   :  { %v1507_v46 = vmul.f32 1.442695, %v1505_v42  ;;  %v1506_v47 = vsub.f32 %v1498_v8, %v1504_v21 }
0x1022   :  { %v1641_v49 = vpop.xlane.xlu1 %1640 }
0x1023   :  { %2930 = vpow2.f32 %v1507_v46  ;;  %v1509_v24 = vmul.f32 1.442695, %v1506_v47  ;;  %v1645_v51 = vsub.f32 %v1637_v10, %v1641_v49 }
0x1024   :  { %v1644_v44 = vpop.xlane.xlu0 %1643 }
0x1025   :  { %2932 = vpow2.f32 %v1509_v24  ;;  %v1647_v59 = vmul.f32 1.442695, %v1645_v51  ;;  %v1646_v45 = vsub.f32 %v1638_v12, %v1644_v44 }
0x1027   :  { %2934 = vpow2.f32 %v1647_v59  ;;  %v1649_v63 = vmul.f32 1.442695, %v1646_v45 }
0x1028   :  { %v1781_v53 = vpop.xlane.xlu1 %1780 }
0x1029   :  { %2936 = vpow2.f32 %v1649_v63  ;;  %v1785_v54 = vsub.f32 %v1777_v7, %v1781_v53 }
0x102a   :  { %v1784_v55 = vpop.xlane.xlu0 %1783 }
0x102b   :  { %v1787_v56 = vmul.f32 1.442695, %v1785_v54  ;;  %v1786_v57 = vsub.f32 %v1778_v22, %v1784_v55  ;;  %v1228_v22 = vld [vmem:[%s3576_s4 + $0xb0] sm:$0xff] }
0x102d   :  { %v2931_v58 = vpop.eup %2930  ;;  %2938 = vpow2.f32 %v1787_v56  ;;  %v1789_v48 = vmul.f32 1.442695, %v1786_v57 }
0x102e   :  { %v1511_v60 = vsel %vm381_vm4, %v2931_v58, 0.0 }
0x102f   :  { %v2933_v61 = vpop.eup %2932  ;;  %2940 = vpow2.f32 %v1789_v48  ;;  %1512 = vadd.xlane.f32.xlu1 %v1511_v60 }
0x1030   :  { %v1921_v50 = vpop.xlane.xlu1 %1920  ;;  %v1514_v52 = vsel %vm381_vm4, %v2933_v61, 0.0 }
0x1031   :  { %v3414_v1 = vpop.eup %2934  ;;  %v1925_v2 = vsub.f32 %v1917_v31, %v1921_v50  ;;  %1515 = vadd.xlane.f32.xlu0 %v1514_v52 }
0x1032   :  { %v1924_v3 = vpop.xlane.xlu0 %1923  ;;  %v1651_v4 = vsel %vm381_vm4, %v3414_v1, 0.0 }
0x1033   :  { %v2937_v5 = vpop.eup %2936  ;;  %v1927_v6 = vmul.f32 1.442695, %v1925_v2  ;;  %v1926_v8 = vsub.f32 %v1918_v35, %v1924_v3  ;;  %1652 = vadd.xlane.f32.xlu1 %v1651_v4 }
0x1034   :  { %v1281_v10 = vpop.permute.xlu1 %1280  ;;  %v1654_v11 = vsel %vm381_vm4, %v2937_v5, 0.0 }
0x1035   :  { %2942 = vpow2.f32 %v1927_v6  ;;  %v1929_v12 = vmul.f32 1.442695, %v1926_v8  ;;  %v1416_v13 = vadd.f32 %v3370_v32, %v1281_v10  ;;  %1655 = vadd.xlane.f32.xlu0 %v1654_v11 }
0x1037   :  { %v3420_v14 = vpop.eup %2938  ;;  %2944 = vpow2.f32 %v1929_v12  ;;  %v1522_v15 = vpack.c.bf16 %v1416_v13, %v1416_v13 }
0x1038   :  { %v1791_v16 = vsel %vm381_vm4, %v3420_v14, 0.0 }
0x1039   :  { %v2941_v17 = vpop.eup %2940  ;;  %v1527_v18 = vsel %vm381_vm4, %v1522_v15, 0  ;;  %1792 = vadd.xlane.f32.xlu0 %v1791_v16 }
0x103a   :  { %2724 = vmatpush3.bf16.xpose.msra.mxu0 %v1527_v18  ;;  %v1794_v19 = vsel %vm381_vm4, %v2941_v17, 0.0  ;;  %v1286_v25 = vpop.permute.xlu0 %1285 }
0x103b   :  { %2735 = vmatprep.subr.bf16.mxu0 %v2977_v39  ;;  %v1419_v30 = vadd.f32 %v3374_v41, %v1286_v25 }
0x103d   :  { %1795 = vadd.xlane.f32.xlu0 %v1794_v19  ;;  %v1662_v36 = vpack.c.bf16 %v1419_v30, %v1419_v30 }
0x103f   :  { %v3427_v20 = vpop.eup %2942  ;;  %v1667_v46 = vsel %vm381_vm4, %v1662_v36, 0 }
0x1040   :  { %v1931_v32 = vsel %vm381_vm4, %v3427_v20, 0.0 }
0x1041   :  { %v3431_v7 = vpop.eup %2944  ;;  %1932 = vadd.xlane.f32.xlu1 %v1931_v32 }
0x1042   :  { %v1934_v9 = vsel %vm381_vm4, %v3431_v7, 0.0 }
0x1043   :  { %1935 = vadd.xlane.f32.xlu0 %v1934_v9 }
0x1052   :  { %1290 = vperm.xlu1 %2819, %v1228_v22  }
0x1059   :  { %1295 = vperm.xlu0 %2818, %v1229_v23  }
0x10bc   :  { %v1513_v27 = vpop.xlane.xlu1 %1512 }
0x10bd   :  { %2946 = vrcp.f32 %v1513_v27 }
0x10be   :  { %v1516_v28 = vpop.xlane.xlu0 %1515 }
0x10bf   :  { %2948 = vrcp.f32 %v1516_v28 }
0x10c0   :  { %v1653_v29 = vpop.xlane.xlu1 %1652 }
0x10c2   :  { %v1656_v26 = vpop.xlane.xlu0 %1655 }
0x10c3   :  { %2950 = vrcp.f32 %v1656_v26 }
0x10c4   :  { %2952 = vrcp.f32 %v1653_v29 }
0x10c6   :  { %v1793_v31 = vpop.xlane.xlu0 %1792 }
0x10c7   :  { %v2947_v34 = vpop.eup %2946 }
0x10c8   :  { %v1519_v37 = vmul.f32 %v2947_v34, %v2931_v58 }
0x10c9   :  { %v2949_v35 = vpop.eup %2948 }
0x10ca   :  { %v1520_v38 = vmul.f32 %v2949_v35, %v2933_v61  ;;  %v1796_v40 = vpop.xlane.xlu0 %1795 }
0x10cb   :  { %2954 = vrcp.f32 %v1796_v40 }
0x10cc   :  { %v1521_v42 = vpack.c.bf16 %v1520_v38, %v1519_v37  ;;  %2956 = vrcp.f32 %v1793_v31 }
0x10cd   :  { %v2951_v21 = vpop.eup %2950 }
0x10ce   :  { %v1933_v47 = vpop.xlane.xlu1 %1932  ;;  %2726 = vmatmul.mubr.msk.bf16.vlgmr.msra.gmra.mrb[32].mxu0 %vm381_vm4, %v1521_v42  ;;  %v2953_v49 = vpop.eup %2952  ;;  %v1660_v41 = vmul.f32 %v2951_v21, %v2937_v5 }
0x10cf   :  { %2736 = vmatpush3.bf16.xpose.msra.mxu0 %v1667_v46  ;;  %2737 = vmatprep.mubr.msk.bf16.mxu0 %vm2978_vm1, %v2977_v39  ;;  %v1659_v51 = vmul.f32 %v2953_v49, %v3414_v1 }
0x10d0   :  { %2747 = vmatprep.subr.bf16.mxu0 %v2977_v39  ;;  %v1936_v24 = vpop.xlane.xlu0 %1935 }
0x10d1   :  { %2958 = vrcp.f32 %v1936_v24  ;;  %v1661_v45 = vpack.c.bf16 %v1660_v41, %v1659_v51 }
0x10d2   :  { %v1291_v44 = vpop.permute.xlu1 %1290  ;;  %2960 = vrcp.f32 %v1933_v47  ;;  %v2513_v47 = vld [vmem:[%s3577_s5 + $0xa] ss:$0 sm:$0xff] }
0x10d3   :  { %v1424_v59 = vadd.f32 %v3368_v43, %v1291_v44 }
0x10d5   :  { %v1802_v63 = vpack.c.bf16 %v1424_v59, %v1424_v59  ;;  %v2955_v53 = vpop.eup %2954 }
0x10d6   :  { %2738 = vmatmul.mubr.msk.bf16.vlgmr.msra.gmra.mrb[36].mxu0 %vm381_vm4, %v1661_v45  ;;  %v2957_v55 = vpop.eup %2956  ;;  %v1800_v57 = vmul.f32 %v2955_v53, %v2941_v17  ;;  %v2871_v17 = vld [vmem:[%s3575_s2 + $0x78] sm:$0xff]  }
0x10d7   :  { %v1807_v54 = vsel %vm381_vm4, %v1802_v63, 0  ;;  %2749 = vmatprep.mubr.msk.bf16.mxu0 %vm2978_vm1, %v2977_v39  ;;  %v1799_v43 = vmul.f32 %v2957_v55, %v3420_v14  ;;  %v2870_v14 = vld [vmem:[%s3575_s2 + $0x70] sm:$0xff]  }
0x10d8   :  { %2748 = vmatpush3.bf16.xpose.msra.mxu0 %v1807_v54  ;;  %v1296_v56 = vpop.permute.xlu0 %1295  ;;  %2766 = vmatpush3.bf16.msra.mxu1 %v2870_v14  ;;  %v2518_v14 = vld [vmem:[%s3577_s5 + $0xc] ss:$0 sm:$0xff] }
0x10d9   :  { %v1427_v58 = vadd.f32 %v3372_v33, %v1296_v56  ;;  %2759 = vmatprep.subr.bf16.mxu0 %v2977_v39  ;;  %v1801_v60 = vpack.c.bf16 %v1800_v57, %v1799_v43  ;;  %2767 = vmatprep.subr.bf16.mxu1 %v2977_v39 }
0x10db   :  { %v1942_v48 = vpack.c.bf16 %v1427_v58, %v1427_v58  ;;  %v2959_v61 = vpop.eup %2958 }
0x10dc   :  { %v2961_v52 = vpop.eup %2960  ;;  %v1940_v1 = vmul.f32 %v2959_v61, %v3431_v7  ;;  %2768 = vmatpush3.bf16.msra.mxu1 %v2871_v17 }
0x10dd   :  { %v1947_v50 = vsel %vm381_vm4, %v1942_v48, 0  ;;  %v1939_v33 = vmul.f32 %v2961_v52, %v3427_v20  ;;  %2781 = vmatprep.subr.bf16.mxu1 %v2977_v39  ;;  %v2873_v52 = vld [vmem:[%s3579_s3 + $0x18] sm:$0xff]  }
0x10df   :  { %2750 = vmatmul.mubr.msk.bf16.vlgmr.msra.gmra.mrb[40].mxu0 %vm381_vm4, %v1801_v60  ;;  %v1941_v2 = vpack.c.bf16 %v1940_v1, %v1939_v33 }
0x10e0   :  { %2760 = vmatpush3.bf16.xpose.msra.mxu0 %v1947_v50  ;;  %2761 = vmatprep.mubr.msk.bf16.mxu0 %vm2978_vm1, %v2977_v39 }
0x10e1   :  { %2773 = vmatprep.subr.bf16.mxu0 %v2977_v39 }
0x10e7   :  { %2762 = vmatmul.mubr.msk.bf16.vlgmr.msra.gmra.mrb[44].mxu0 %vm381_vm4, %v1941_v2 }
0x10e8   :  { %2777 = vmatprep.mubr.msk.bf16.mxu0 %vm2978_vm1, %v2977_v39 }
0x11a1   :  { %v1563_v3 = vpop.f32.mrb[32].mxu0 }
0x11a2   :  { %v2727_v4 = vpop.f32.mrb[33].mxu0 }
0x11a3   :  { %v1566_v5 = vpop.f32.mrb[34].mxu0 }
0x11a4   :  { %v2728_v6 = vpop.f32.mrb[35].mxu0 }
0x11a9   :  { %v1703_v8 = vpop.f32.mrb[36].mxu0 }
0x11aa   :  { %v2739_v10 = vpop.f32.mrb[37].mxu0 }
0x11ab   :  { %v1706_v11 = vpop.f32.mrb[38].mxu0 }
0x11ac   :  { %v2835_v12 = vpack.i.bf16 %v1706_v11, %v1703_v8  ;;  %v2740_v13 = vpop.f32.mrb[39].mxu0  ;;  %v2517_v8 = vld [vmem:[%s3577_s5 + $0xb] ss:$0 sm:$0xff] }
0x11ae   :  { %2836 = vrot.lane.b32.xlu1 %v2835_v12, %s2979_s21 }
0x11b2   :  { %v1843_v15 = vpop.f32.mrb[40].mxu0 }
0x11b3   :  { %v2751_v16 = vpop.f32.mrb[41].mxu0 }
0x11b4   :  { %v1846_v18 = vpop.f32.mrb[42].mxu0 }
0x11b5   :  { %v2840_v19 = vpack.i.bf16 %v1846_v18, %v1843_v15  ;;  %v2752_v20 = vpop.f32.mrb[43].mxu0 }
0x11b6   :  { %v2875_v20 = vld [vmem:[%s3575_s2 + $0xa8] sm:$0xff]  }
0x11b7   :  { %2841 = vrot.lane.b32.xlu1 %v2840_v19, %s2980_s24  ;;  %v2874_v19 = vld [vmem:[%s3575_s2 + $0xa0] sm:$0xff]  }
0x11ba   :  { %v1983_v32 = vpop.f32.mrb[44].mxu0 }
0x11bb   :  { %v2763_v7 = vpop.f32.mrb[45].mxu0 }
0x11bc   :  { %v1986_v9 = vpop.f32.mrb[46].mxu0  ;;  %v2877_v7 = vld [vmem:[%s3575_s2 + $0xb8] sm:$0xff]  }
0x11bd   :  { %v2845_v22 = vpack.i.bf16 %v1986_v9, %v1983_v32  ;;  %v2764_v23 = vpop.f32.mrb[47].mxu0  ;;  %v2876_v32 = vld [vmem:[%s3575_s2 + $0xb0] sm:$0xff]   ;;  %v2519_v9 = vld [vmem:[%s3577_s5 + $0xd] ss:$0 sm:$0xff] }
0x11bf   :  { %2846 = vrot.lane.b32.xlu1 %v2845_v22, %s2981_s0 }
0x1220   :  { %v2837_v25 = vpop.permute.xlu1 %2836 }
0x1221   :  { %v2839_v28 = vunpack.i.h.bf16 %v2837_v25  ;;  %v2838_v29 = vunpack.i.l.bf16 %v2837_v25 }
0x1223   :  { %v2015_v34 = vsel %vm328_vm3, %v1566_v5, %v2839_v28  ;;  %v2014_v35 = vsel %vm328_vm3, %v1563_v3, %v2838_v29 }
0x1229   :  { %v2842_v27 = vpop.permute.xlu1 %2841 }
0x122a   :  { %v2844_v26 = vunpack.i.h.bf16 %v2842_v27  ;;  %v2843_v30 = vunpack.i.l.bf16 %v2842_v27 }
0x122c   :  { %v2017_v38 = vsel %vm381_vm4, %v2015_v34, %v2844_v26  ;;  %v2016_v40 = vsel %vm381_vm4, %v2014_v35, %v2843_v30 }
0x1231   :  { %v2847_v31 = vpop.permute.xlu1 %2846 }
0x1232   :  { %v2849_v36 = vunpack.i.h.bf16 %v2847_v31  ;;  %v2848_v37 = vunpack.i.l.bf16 %v2847_v31 }
0x1234   :  { %v2019_v42 = vsel %vm901_vm5, %v2017_v38, %v2849_v36  ;;  %v2018_v21 = vsel %vm901_vm5, %v2016_v40, %v2848_v37 }
0x1235   :  { %v2020_v46 = vpack.c.bf16 %v2019_v42, %v2018_v21 }
0x1237   :  { %2770 = vmatmul.mubr.msk.bf16.vlgmr.msra.gmra.mrb[52].mxu1 %vm28_vm0, %v2020_v46  ;;  %v2523_v46 = vld [vmem:[%s3577_s5 + $0xe] ss:$0 sm:$0xff] }
0x1238   :  { %2789 = vmatprep.mubr.msk.bf16.mxu1 %vm2978_vm1, %v2977_v39  ;;  %2782 = vmatpush3.bf16.msra.mxu1 %v2874_v19  ;;  %v2880_v19 = vld [vmem:[%s3575_s2 + $0xd0] sm:$0xff]  }
0x1239   :  { %2783 = vmatprep.subr.bf16.mxu1 %v2977_v39 }
0x123c   :  { %2784 = vmatpush3.bf16.msra.mxu1 %v2875_v20 }
0x123d   :  { %2785 = vmatprep.subr.bf16.mxu1 %v2977_v39 }
0x1240   :  { %2786 = vmatpush3.bf16.msra.mxu1 %v2876_v32  ;;  %v2881_v32 = vld [vmem:[%s3575_s2 + $0xd8] sm:$0xff]  }
0x1241   :  { %2787 = vmatprep.subr.bf16.mxu1 %v2977_v39 }
0x1244   :  { %2788 = vmatpush3.bf16.msra.mxu1 %v2877_v7  ;;  %v2531_v7 = vld [vmem:[%s3577_s5 + $0x12] ss:$0 sm:$0xff] }
0x130a   :  { %v2074_v49 = vpop.f32.mrb[52].mxu1 }
0x130b   :  { %v2075_v41 = vadd.f32 %v2513_v47, %v2074_v49  ;;  %v2771_v24 = vpop.f32.mrb[53].mxu1 }
0x130c   :  { %v2077_v51 = vpop.f32.mrb[54].mxu1 }
0x130d   :  { %v2078_v44 = vadd.f32 %v2513_v47, %v2077_v51  ;;  %v2772_v59 = vpop.f32.mrb[55].mxu1  ;;  %v2081_v45 = vadd.f32 %v2075_v41, %v3333_v62 }
0x130f   :  { %v2083_v63 = vsel %vm28_vm0, %v2081_v45, 0.0  ;;  %v2082_v53 = vadd.f32 %v2078_v44, %v3335_v0  ;;  %v2872_v0 = vld [vmem:[%s3579_s3 + $0x10] sm:$0xff]  }
0x1310   :  { %2084 = vadd.xlane.f32.xlu1 %v2083_v63  ;;  %2774 = vmatpush3.bf16.msra.mxu0 %v2872_v0  ;;  %v2879_v0 = vld [vmem:[%s3575_s2 + $0xc8] sm:$0xff]  }
0x1311   :  { %v2086_v54 = vsel %vm28_vm0, %v2082_v53, 0.0  ;;  %2775 = vmatprep.subr.bf16.mxu0 %v2977_v39 }
0x1312   :  { %2087 = vadd.xlane.f32.xlu0 %v2086_v54 }
0x1314   :  { %2776 = vmatpush3.bf16.msra.mxu0 %v2873_v52 }
0x1315   :  { %2793 = vmatprep.subr.bf16.mxu0 %v2977_v39 }
0x139d   :  { %v2085_v55 = vpop.xlane.xlu1 %2084 }
0x139e   :  { %v2089_v56 = vmul.f32 0.03125, %v2085_v55 }
0x139f   :  { %v2088_v57 = vpop.xlane.xlu0 %2087 }
0x13a0   :  { %v2091_v58 = vsub.f32 %v2081_v45, %v2089_v56  ;;  %v2090_v43 = vmul.f32 0.03125, %v2088_v57 }
0x13a2   :  { %v2092_v48 = vsub.f32 %v2082_v53, %v2090_v43  ;;  %v2093_v60 = vmul.f32 %v2091_v58, %v2091_v58 }
0x13a4   :  { %v2095_v61 = vsel %vm28_vm0, %v2093_v60, 0.0  ;;  %v2094_v50 = vmul.f32 %v2092_v48, %v2092_v48 }
0x13a5   :  { %2096 = vadd.xlane.f32.xlu0 %v2095_v61 }
0x13a6   :  { %v2098_v62 = vsel %vm28_vm0, %v2094_v50, 0.0 }
0x13a7   :  { %2099 = vadd.xlane.f32.xlu1 %v2098_v62  ;;  %v2878_v62 = vld [vmem:[%s3575_s2 + $0xc0] sm:$0xff]   ;;  %s2982_s2 = smov 32  }
0x1432   :  { %v2097_v1 = vpop.xlane.xlu0 %2096 }
0x1433   :  { %v2101_v33 = vmul.f32 0.03125, %v2097_v1 }
0x1434   :  { %v2100_v2 = vpop.xlane.xlu1 %2099 }
0x1435   :  { %v2103_v3 = vadd.f32 1e-05, %v2101_v33  ;;  %v2102_v4 = vmul.f32 0.03125, %v2100_v2 }
0x1437   :  { %2962 = vrsqrt.f32 %v2103_v3  ;;  %v2104_v5 = vadd.f32 1e-05, %v2102_v4 }
0x1439   :  { %2964 = vrsqrt.f32 %v2104_v5 }
0x1441   :  { %v2963_v6 = vpop.eup %2962 }
0x1442   :  { %v2107_v10 = vmul.f32 %v2963_v6, %v2091_v58 }
0x1443   :  { %v2965_v11 = vpop.eup %2964 }
0x1444   :  { %v2113_v12 = vmul.f32 %v2517_v8, %v2107_v10  ;;  %v2108_v13 = vmul.f32 %v2965_v11, %v2092_v48  ;;  %v2529_v10 = vld [vmem:[%s3577_s5 + $0xf] ss:$0 sm:$0xff] }
0x1446   :  { %v2114_v15 = vmul.f32 %v2517_v8, %v2108_v13  ;;  %v2119_v16 = vadd.f32 %v2518_v14, %v2113_v12 }
0x1448   :  { %v2120_v17 = vadd.f32 %v2518_v14, %v2114_v15  ;;  %v2530_v14 = vld [vmem:[%s3577_s5 + $0x10] ss:$0 sm:$0xff] }
0x144a   :  { %v2121_v18 = vpack.c.bf16 %v2120_v17, %v2119_v16 }
0x144c   :  { %2778 = vmatmul.mubr.msk.bf16.vlgmr.msra.gmra.mrb[48].mxu0 %vm28_vm0, %v2121_v18 }
0x144d   :  { %2797 = vmatprep.mubr.msk.bf16.mxu0 %vm2978_vm1, %v2977_v39  ;;  %2794 = vmatpush3.bf16.msra.mxu0 %v2878_v62 }
0x144e   :  { %2795 = vmatprep.subr.bf16.mxu0 %v2977_v39 }
0x1451   :  { %2796 = vmatpush3.bf16.msra.mxu0 %v2879_v0 }
0x1452   :  { %2801 = vmatprep.subr.bf16.mxu0 %v2977_v39 }
0x151f   :  { %v2175_v22 = vpop.f32.mrb[48].mxu0 }
0x1520   :  { %v2176_v23 = vadd.f32 %v2519_v9, %v2175_v22  ;;  %v2779_v25 = vpop.f32.mrb[49].mxu0 }
0x1521   :  { %v2178_v27 = vpop.f32.mrb[50].mxu0 }
0x1522   :  { %v2184_v28 = vmul.f32 0.70710677, %v2176_v23  ;;  %v2179_v29 = vadd.f32 %v2519_v9, %v2178_v27  ;;  %v2780_v26 = vpop.f32.mrb[51].mxu0  ;;  %v2182_v36 = vmul.f32 0.5, %v2176_v23 }
0x1524   :  { %2966 = verf.f32 %v2184_v28  ;;  %v2185_v30 = vmul.f32 0.70710677, %v2179_v29  ;;  %v2183_v37 = vmul.f32 0.5, %v2179_v29 }
0x1526   :  { %2968 = verf.f32 %v2185_v30 }
0x152e   :  { %v2967_v31 = vpop.eup %2966 }
0x152f   :  { %v2188_v34 = vadd.f32 1.0, %v2967_v31 }
0x1530   :  { %v2969_v35 = vpop.eup %2968 }
0x1531   :  { %v2189_v38 = vadd.f32 1.0, %v2969_v35  ;;  %v2190_v40 = vmul.f32 %v2188_v34, %v2182_v36 }
0x1533   :  { %v2191_v42 = vmul.f32 %v2189_v38, %v2183_v37 }
0x1535   :  { %v2192_v21 = vpack.c.bf16 %v2191_v42, %v2190_v40 }
0x1537   :  { %2790 = vmatmul.mubr.msk.bf16.vlgmr.msra.gmra.mrb[56].mxu1 %vm1105_vm6, %v2192_v21 }
0x160a   :  { %v2258_v47 = vpop.f32.mrb[56].mxu1 }
0x160b   :  { %v2259_v49 = vadd.f32 %v2523_v46, %v2258_v47  ;;  %v2791_v41 = vpop.f32.mrb[57].mxu1 }
0x160c   :  { %v2261_v24 = vpop.f32.mrb[58].mxu1 }
0x160d   :  { %v2262_v51 = vadd.f32 %v2523_v46, %v2261_v24  ;;  %v2792_v44 = vpop.f32.mrb[59].mxu1  ;;  %v2265_v59 = vadd.f32 %v2259_v49, %v2119_v16 }
0x160f   :  { %v2267_v45 = vsel %vm28_vm0, %v2265_v59, 0.0  ;;  %v2266_v63 = vadd.f32 %v2262_v51, %v2120_v17 }
0x1610   :  { %2268 = vadd.xlane.f32.xlu1 %v2267_v45 }
0x1611   :  { %v2270_v53 = vsel %vm28_vm0, %v2266_v63, 0.0 }
0x1612   :  { %2271 = vadd.xlane.f32.xlu0 %v2270_v53 }
0x169d   :  { %v2269_v54 = vpop.xlane.xlu1 %2268 }
0x169e   :  { %v2273_v55 = vmul.f32 0.03125, %v2269_v54 }
0x169f   :  { %v2272_v56 = vpop.xlane.xlu0 %2271 }
0x16a0   :  { %v2275_v57 = vsub.f32 %v2265_v59, %v2273_v55  ;;  %v2274_v58 = vmul.f32 0.03125, %v2272_v56 }
0x16a2   :  { %v2276_v43 = vsub.f32 %v2266_v63, %v2274_v58  ;;  %v2277_v48 = vmul.f32 %v2275_v57, %v2275_v57 }
0x16a4   :  { %v2279_v60 = vsel %vm28_vm0, %v2277_v48, 0.0  ;;  %v2278_v61 = vmul.f32 %v2276_v43, %v2276_v43 }
0x16a5   :  { %2280 = vadd.xlane.f32.xlu1 %v2279_v60 }
0x16a6   :  { %v2282_v50 = vsel %vm28_vm0, %v2278_v61, 0.0 }
0x16a7   :  { %2283 = vadd.xlane.f32.xlu0 %v2282_v50 }
0x1732   :  { %v2281_v52 = vpop.xlane.xlu1 %2280 }
0x1733   :  { %v2285_v1 = vmul.f32 0.03125, %v2281_v52 }
0x1734   :  { %v2284_v33 = vpop.xlane.xlu0 %2283 }
0x1735   :  { %v2287_v2 = vadd.f32 1e-05, %v2285_v1  ;;  %v2286_v3 = vmul.f32 0.03125, %v2284_v33 }
0x1737   :  { %2970 = vrsqrt.f32 %v2287_v2  ;;  %v2288_v4 = vadd.f32 1e-05, %v2286_v3 }
0x1739   :  { %2972 = vrsqrt.f32 %v2288_v4 }
0x1741   :  { %v2971_v5 = vpop.eup %2970 }
0x1742   :  { %v2291_v6 = vmul.f32 %v2971_v5, %v2275_v57 }
0x1743   :  { %v2973_v8 = vpop.eup %2972 }
0x1744   :  { %v2292_v11 = vmul.f32 %v2973_v8, %v2276_v43  ;;  %v2297_v12 = vmul.f32 %v2529_v10, %v2291_v6 }
0x1746   :  { %v2298_v13 = vmul.f32 %v2529_v10, %v2292_v11  ;;  %v2303_v16 = vadd.f32 %v2530_v14, %v2297_v12 }
0x1748   :  { %v2304_v15 = vadd.f32 %v2530_v14, %v2298_v13 }
0x174a   :  { %v2306_v17 = vrot.slane %v2304_v15, 7 }
0x174c   :  { %v2309_v18 = vsel %vm2308_vm7, %v2303_v16, %v2306_v17 }
0x174d   :  { %v2314_v20 = vpack.c.bf16 %v2309_v18, %v2309_v18 }
0x174f   :  { %2798 = vmatmul.mubr.msk.bf16.vlgmr.msra.gmra.mrb[52].mxu0 %vm28_vm0, %v2314_v20 }
0x1750   :  { %2802 = vmatpush3.bf16.msra.mxu0 %v2880_v19  ;;  %2805 = vmatprep.mubr.msk.bf16.mxu0 %vm2978_vm1, %v2977_v39 }
0x1751   :  { %2803 = vmatprep.subr.bf16.mxu0 %v2977_v39  ;;  %v2535_v39 = vld [vmem:[%s3577_s5 + $0x13] ss:$0 sm:$0xff] }
0x1754   :  { %2804 = vmatpush3.bf16.msra.mxu0 %v2881_v32 }
0x1822   :  { %v2369_v9 = vpop.f32.mrb[52].mxu0 }
0x1823   :  { %v2370_v22 = vadd.f32 %v2531_v7, %v2369_v9  ;;  %v2799_v23 = vpop.f32.mrb[53].mxu0 }
0x1824   :  { %v2372_v25 = vpop.f32.mrb[54].mxu0 }
0x1825   :  { %v2379_v27 = vpack.c.bf16 %v2370_v22, %v2370_v22  ;;  %v2800_v28 = vpop.f32.mrb[55].mxu0 }
0x1827   :  { %2806 = vmatmul.mubr.msk.bf16.vlgmr.msra.gmra.mrb[56].mxu0 %vm28_vm0, %v2379_v27 }
0x18fa   :  { %v2434_v29 = vpop.f32.mrb[56].mxu0 }
0x18fb   :  { %v2435_v26 = vadd.f32 %v2535_v39, %v2434_v29  ;;  %v2807_v30 = vpop.f32.mrb[57].mxu0 }
0x18fc   :  { %v2437_v31 = vpop.f32.mrb[58].mxu0 }
0x18fd   :  { %2441 = vrot.lane.b32.xlu0 %v2435_v26, %s2982_s2  ;;  %v2808_v34 = vpop.f32.mrb[59].mxu0 }
0x196f   :  { %v2442_v35 = vpop.permute.xlu0 %2441 }
0x1970   :  { %v2444_v36 = vsel %vm28_vm0, %v2370_v22, %v2442_v35 }
0x1971   :  { %v2445_v37 = vsel %vm1105_vm6, %v2444_v36, 0.0 }
0x1972   :  { %v2447_v38 = vsel %vm2446_vm8, %v2445_v37, 0.0 }
0x1973   :  { %2448 = vst [vmem:[%s3580_s6] sm:$0xff] %v2447_v38 }

</bundles_post_ra>
